<compile_context>
chip_gen: v5e
topology: v5e:2x2
jax: 0.10.0
libtpu: 0.0.40
codegen_flags: <defaults>
</compile_context>

<pallas_src>
import math
import functools

import jax
import jax.numpy as jnp
from jax import lax
from jax.experimental import pallas as pl
from jax.experimental.pallas import tpu as pltpu

# --- config mirroring hyper_params used in the module (small test sizes) ----
MAX_VISITS = 8        # hyper_params.MAX_VISITS
HIDDEN = 32           # self.hidden_size == self.k (d_model)
BATCH = 2
N_HEADS = 1
ATTN_DEPTH = 2
DIM_FF = 200          # dim_feedforward in MyTransformerEncoderLayer
DIM_FF_PAD = 256      # zero-padded to a multiple of 128 lanes (bit-exact)
LN_EPS = 1e-5
SEQ = MAX_VISITS + 1  # 9  (CLS + visits)
SEQ_PAD = 16          # sublane-aligned padded sequence length
NEG_INF = -1e30


# ---------------------------------------------------------------------------
# Fused Pallas kernel: CLS + PE + attn_depth encoder layers + zero-mask
# ---------------------------------------------------------------------------
def fused_visit_transformer_kernel(
        x_ref,        # (B*V, H)     visit embeddings, batch-stacked
        cls_ref,      # (1, H)       CLS embedding
        pe_ref,       # (SP, H)      positional encoding (rows >= S unused)
        keep_ref,     # (B*SP, 1)    1.0 for persons with data, 0.0 otherwise
        wqkv_ref,     # (L, H, 3H)   packed [Wq|Wk|Wv]^T
        bqkv_ref,     # (L, 1, 3H)
        wo_ref,       # (L, H, H)
        w1_ref,       # (L, H, FF_PAD)
        b1_ref,       # (L, 1, FF_PAD)
        w2_ref,       # (L, FF_PAD, H)
        small_ref,    # (L, 6, H)    rows: ln1w, ln1b, ln2w, ln2b, bo, b2
        o_ref,        # (B*SP, H)
        h_scr,        # VMEM (B*SP, H) scratch
        attn_scr,     # VMEM (B*SP, H) scratch
        *, batch, n_visits_dim):
    H = x_ref.shape[1]
    V = n_visits_dim
    SP = pe_ref.shape[0]          # padded sequence (sublane-aligned)
    S = V + 1                     # real sequence (CLS + visits)
    L = wqkv_ref.shape[0]
    scale = 1.0 / math.sqrt(H / N_HEADS)

    # key mask: real positions 0..S-1 -> 0, padded positions -> -1e30
    kmask = jnp.where(
        lax.broadcasted_iota(jnp.int32, (1, SP), 1) < S, 0.0, NEG_INF)

    # ---- 1) prepend CLS and add positional encoding, batch segments start at
    #         sublane-aligned offsets b*SP; padded rows stay zero -------------
    pe = pe_ref[...]                              # (SP, H)
    cls_pe0 = cls_ref[...] + pe[0:1, :]           # (1, H)
    h_scr[...] = jnp.zeros_like(h_scr)
    for b in range(batch):
        base = b * SP
        h_scr[base:base + 1, :] = cls_pe0
        h_scr[base + 1:base + S, :] = x_ref[b * V:(b + 1) * V, :] + pe[1:S, :]
    h = h_scr[...]                                # (B*SP, H)

    # ---- 2) attn_depth pre-LN encoder layers (statically unrolled) ----------
    for l in range(L):
        wqkv = wqkv_ref[l]
        bqkv = bqkv_ref[l]
        wo = wo_ref[l]
        w1 = w1_ref[l]
        b1 = b1_ref[l]
        w2 = w2_ref[l]
        sp_ = small_ref[l]
        ln1w, ln1b = sp_[0:1, :], sp_[1:2, :]
        ln2w, ln2b = sp_[2:3, :], sp_[3:4, :]
        bo, b2 = sp_[4:5, :], sp_[5:6, :]

        # LayerNorm 1 + fused QKV projection on the stacked batch
        mu = jnp.mean(h, axis=-1, keepdims=True)
        xc = h - mu
        var = jnp.mean(xc * xc, axis=-1, keepdims=True)
        xn = xc * lax.rsqrt(var + LN_EPS) * ln1w + ln1b
        qkv = jnp.dot(xn, wqkv, preferred_element_type=jnp.float32) + bqkv

        # single-head self-attention, per batch row (B is tiny; unrolled);
        # slices / stores are sublane-aligned because segments are SP rows
        for b in range(batch):
            lo = b * SP
            q = qkv[lo:lo + SP, 0:H]
            k = qkv[lo:lo + SP, H:2 * H]
            v = qkv[lo:lo + SP, 2 * H:3 * H]
            s = lax.dot_general(q, k, (((1,), (1,)), ((), ())),
                                preferred_element_type=jnp.float32) * scale
            s = s + kmask                         # padded keys never attended
            s = s - jnp.max(s, axis=-1, keepdims=True)
            p = jnp.exp(s)
            p = p * pl.reciprocal(jnp.sum(p, axis=-1, keepdims=True),
                                  approx=True)
            attn_scr[lo:lo + SP, :] = jnp.dot(p, v,
                                              preferred_element_type=jnp.float32)

        attn = jnp.dot(attn_scr[...], wo, preferred_element_type=jnp.float32) + bo
        h = h + attn

        # LayerNorm 2 + feed-forward (ReLU); FF dim zero-padded to 256
        mu2 = jnp.mean(h, axis=-1, keepdims=True)
        hc = h - mu2
        var2 = jnp.mean(hc * hc, axis=-1, keepdims=True)
        hn = hc * lax.rsqrt(var2 + LN_EPS) * ln2w + ln2b
        f = jnp.maximum(jnp.dot(hn, w1, preferred_element_type=jnp.float32) + b1,
                        0.0)
        f = jnp.dot(f, w2, preferred_element_type=jnp.float32) + b2
        h = h + f

    # ---- 3) fused epilogue: zero rows of persons without any visits ---------
    o_ref[...] = h * keep_ref[...]


# ---------------------------------------------------------------------------
# Wrapper: single pallas_call (everything fits VMEM with huge margin)
# ---------------------------------------------------------------------------
def visit_transformer_forward(x, params, n_visits):
    """x: (B, MAX_VISITS, HIDDEN) float32; n_visits: (B,) int32.

    Returns (output_emb (B, V+1, H), output_rev=None) matching the PyTorch
    module with use_mask=True, IS_PRETRAINING=False, GCT disabled.
    """
    B, V, H = x.shape
    S = V + 1
    SP = SEQ_PAD

    # mask bookkeeping (matches torch code; mask is NOT passed to the encoder)
    min_vals = jnp.minimum(n_visits, V)
    keep = jnp.where(min_vals == 0, 0.0, 1.0).astype(jnp.float32)     # (B,)
    keep_rows = jnp.repeat(keep, SP).reshape(B * SP, 1)

    x2 = x.reshape(B * V, H)   # free reshape in the wrapper (row-major)

    out2 = pl.pallas_call(
        functools.partial(fused_visit_transformer_kernel,
                          batch=B, n_visits_dim=V),
        out_shape=jax.ShapeDtypeStruct((B * SP, H), jnp.float32),
        scratch_shapes=[pltpu.VMEM((B * SP, H), jnp.float32),
                        pltpu.VMEM((B * SP, H), jnp.float32)],
    )(x2, params["cls"], params["pe"], keep_rows,
      params["wqkv_t"], params["bqkv"], params["wo_t"],
      params["w1_t"], params["b1"], params["w2_t"], params["small"])

    output_rev = None   # GCT component disabled
    # drop the sublane-padding rows (layout plumbing only)
    return out2.reshape(B, SP, H)[:, :S, :], output_rev


# ---------------------------------------------------------------------------
# Parameter / buffer construction (deterministic, synthetic)
# ---------------------------------------------------------------------------
def xavier_normal(key, shape):
    # torch.nn.init.xavier_normal_ for a (out, in) weight
    fan_out, fan_in = shape
    std = math.sqrt(2.0 / (fan_in + fan_out))
    return std * jax.random.normal(key, shape, dtype=jnp.float32)


def make_positional_encoding(max_len, d_model):
    position = jnp.arange(max_len, dtype=jnp.float32)[:, None]
    div_term = jnp.exp(jnp.arange(0, d_model, 2, dtype=jnp.float32)
                       * (-math.log(10000.0) / d_model))
    pe = jnp.zeros((max_len, d_model), jnp.float32)
    pe = pe.at[:, 0::2].set(jnp.sin(position * div_term))
    pe = pe.at[:, 1::2].set(jnp.cos(position * div_term)[:, : d_model // 2])
    return pe


def make_stacked_layer_params(key, d_model, d_ff, d_ff_pad, n_layers):
    """Packed, layer-stacked weights for the fused kernel."""
    H = d_model
    layer_keys = jax.random.split(key, n_layers)
    wqkv_l, wo_l, w1_l, w2_l = [], [], [], []
    for k in layer_keys:
        k1, k2, k3, k4 = jax.random.split(k, 4)
        in_proj_w = xavier_normal(k1, (3 * H, H))    # MHA in_proj_weight
        out_proj_w = xavier_normal(k2, (H, H))       # MHA out_proj.weight
        lin1_w = xavier_normal(k3, (d_ff, H))        # linear1.weight
        lin2_w = xavier_normal(k4, (H, d_ff))        # linear2.weight
        wqkv_l.append(in_proj_w.T)                                       # (H, 3H)
        wo_l.append(out_proj_w.T)                                        # (H, H)
        w1_l.append(jnp.pad(lin1_w.T, ((0, 0), (0, d_ff_pad - d_ff))))   # (H, FFp)
        w2_l.append(jnp.pad(lin2_w.T, ((0, d_ff_pad - d_ff), (0, 0))))   # (FFp, H)

    ones_h = jnp.ones((1, H), jnp.float32)
    zeros_h = jnp.zeros((1, H), jnp.float32)
    # small params per layer: [ln1w, ln1b, ln2w, ln2b, bo, b2] (biases init 0)
    small_one = jnp.concatenate(
        [ones_h, zeros_h, ones_h, zeros_h, zeros_h, zeros_h], axis=0)    # (6, H)
    small = jnp.broadcast_to(small_one[None], (n_layers, 6, H))

    return dict(
        wqkv_t=jnp.stack(wqkv_l),                                    # (L, H, 3H)
        bqkv=jnp.zeros((n_layers, 1, 3 * H), jnp.float32),           # (L, 1, 3H)
        wo_t=jnp.stack(wo_l),                                        # (L, H, H)
        w1_t=jnp.stack(w1_l),                                        # (L, H, FFp)
        b1=jnp.zeros((n_layers, 1, d_ff_pad), jnp.float32),          # (L, 1, FFp)
        w2_t=jnp.stack(w2_l),                                        # (L, FFp, H)
        small=small,                                                 # (L, 6, H)
    )


if __name__ == "__main__":
    key = jax.random.PRNGKey(0)
    kx, kc, kl = jax.random.split(key, 3)

    x = jax.random.normal(kx, (BATCH, MAX_VISITS, HIDDEN), dtype=jnp.float32)
    cls_emb = 0.02 * jax.random.normal(kc, (1, HIDDEN), dtype=jnp.float32)  # std=0.02
    pe = make_positional_encoding(SEQ_PAD, HIDDEN)   # rows >= SEQ unused

    params = dict(cls=cls_emb, pe=pe,
                  **make_stacked_layer_params(kl, HIDDEN, DIM_FF, DIM_FF_PAD,
                                              ATTN_DEPTH))

    # person 0 has 5 visits, person 1 has 0 visits (exercises the zeroing path)
    n_visits = jnp.array([5, 0], dtype=jnp.int32)

    out, out_rev = visit_transformer_forward(x, params, n_visits)
    out = jax.block_until_ready(out)

    assert out.shape == (BATCH, MAX_VISITS + 1, HIDDEN)
    assert bool(jnp.all(out[1] == 0.0))          # person without data is zeroed
    assert bool(jnp.all(jnp.isfinite(out)))
    print("KERNEL_OK")
</pallas_src>

<mosaic_0001>
module attributes {stable_mosaic.version = 11 : i64} {
  func.func @fused_visit_transformer_kernel(%arg0: memref<16x32xf32, #tpu.memory_space<vmem>>, %arg1: memref<1x32xf32, #tpu.memory_space<vmem>>, %arg2: memref<16x32xf32, #tpu.memory_space<vmem>>, %arg3: memref<32x1xf32, #tpu.memory_space<vmem>>, %arg4: memref<2x32x96xf32, #tpu.memory_space<vmem>>, %arg5: memref<2x1x96xf32, #tpu.memory_space<vmem>>, %arg6: memref<2x32x32xf32, #tpu.memory_space<vmem>>, %arg7: memref<2x32x256xf32, #tpu.memory_space<vmem>>, %arg8: memref<2x1x256xf32, #tpu.memory_space<vmem>>, %arg9: memref<2x256x32xf32, #tpu.memory_space<vmem>>, %arg10: memref<2x6x32xf32, #tpu.memory_space<vmem>>, %arg11: memref<32x32xf32, #tpu.memory_space<vmem>>, %arg12: memref<32x32xf32, #tpu.memory_space<vmem>>, %arg13: memref<32x32xf32, #tpu.memory_space<vmem>>) attributes {dimension_semantics = [], scalar_prefetch = 0 : i64, scratch_operands = 2 : i64, tpu.core_type = #tpu.core_type<tc>} {
    %0 = tpu.iota {dimensions = array<i32: 1>} : vector<1x16xi32>
    %c9_i32 = arith.constant 9 : i32
    %1 = vector.broadcast %c9_i32 : i32 to vector<1x16xi32>
    %2 = arith.cmpi slt, %0, %1 : vector<1x16xi32>
    %cst = arith.constant 0.000000e+00 : f32
    %cst_0 = arith.constant -1.000000e+30 : f32
    %3 = vector.broadcast %cst : f32 to vector<1x16xf32>
    %4 = vector.broadcast %cst_0 : f32 to vector<1x16xf32>
    %5 = arith.select %2, %3, %4 : vector<1x16xi1>, vector<1x16xf32>
    %c0 = arith.constant 0 : index
    %c0_1 = arith.constant 0 : index
    %6 = vector.load %arg2[%c0, %c0_1] : memref<16x32xf32, #tpu.memory_space<vmem>>, vector<16x32xf32>
    %c0_2 = arith.constant 0 : index
    %c0_3 = arith.constant 0 : index
    %7 = vector.load %arg1[%c0_2, %c0_3] : memref<1x32xf32, #tpu.memory_space<vmem>>, vector<1x32xf32>
    %8 = vector.extract_strided_slice %6 {offsets = [0, 0], sizes = [1, 32], strides = [1, 1]} : vector<16x32xf32> to vector<1x32xf32>
    %9 = arith.addf %7, %8 : vector<1x32xf32>
    %cst_4 = arith.constant 0.000000e+00 : f32
    %10 = vector.broadcast %cst_4 : f32 to vector<32x32xf32>
    %c0_5 = arith.constant 0 : index
    %c0_6 = arith.constant 0 : index
    %11 = vector.load %arg12[%c0_5, %c0_6] : memref<32x32xf32, #tpu.memory_space<vmem>>, vector<32x32xf32>
    tpu.vector_store %arg12[%c0_5, %c0_6], %10 {strides = array<i32>} : memref<32x32xf32, #tpu.memory_space<vmem>>, vector<32x32xf32>,
    %c0_7 = arith.constant 0 : index
    %c0_8 = arith.constant 0 : index
    %12 = vector.load %arg12[%c0_7, %c0_8] : memref<32x32xf32, #tpu.memory_space<vmem>>, vector<1x32xf32>
    tpu.vector_store %arg12[%c0_7, %c0_8], %9 {strides = array<i32>} : memref<32x32xf32, #tpu.memory_space<vmem>>, vector<1x32xf32>,
    %c0_9 = arith.constant 0 : index
    %c0_10 = arith.constant 0 : index
    %13 = vector.load %arg0[%c0_9, %c0_10] : memref<16x32xf32, #tpu.memory_space<vmem>>, vector<8x32xf32>
    %14 = vector.extract_strided_slice %6 {offsets = [1, 0], sizes = [8, 32], strides = [1, 1]} : vector<16x32xf32> to vector<8x32xf32>
    %15 = arith.addf %13, %14 : vector<8x32xf32>
    %c1 = arith.constant 1 : index
    %c0_11 = arith.constant 0 : index
    %16 = vector.load %arg12[%c1, %c0_11] : memref<32x32xf32, #tpu.memory_space<vmem>>, vector<8x32xf32>
    tpu.vector_store %arg12[%c1, %c0_11], %15 {strides = array<i32>} : memref<32x32xf32, #tpu.memory_space<vmem>>, vector<8x32xf32>,
    %c16 = arith.constant 16 : index
    %c0_12 = arith.constant 0 : index
    %17 = vector.load %arg12[%c16, %c0_12] : memref<32x32xf32, #tpu.memory_space<vmem>>, vector<1x32xf32>
    tpu.vector_store %arg12[%c16, %c0_12], %9 {strides = array<i32>} : memref<32x32xf32, #tpu.memory_space<vmem>>, vector<1x32xf32>,
    %c8 = arith.constant 8 : index
    %c0_13 = arith.constant 0 : index
    %18 = vector.load %arg0[%c8, %c0_13] : memref<16x32xf32, #tpu.memory_space<vmem>>, vector<8x32xf32>
    %19 = vector.extract_strided_slice %6 {offsets = [1, 0], sizes = [8, 32], strides = [1, 1]} : vector<16x32xf32> to vector<8x32xf32>
    %20 = arith.addf %18, %19 : vector<8x32xf32>
    %c17 = arith.constant 17 : index
    %c0_14 = arith.constant 0 : index
    %21 = vector.load %arg12[%c17, %c0_14] : memref<32x32xf32, #tpu.memory_space<vmem>>, vector<8x32xf32>
    tpu.vector_store %arg12[%c17, %c0_14], %20 {strides = array<i32>} : memref<32x32xf32, #tpu.memory_space<vmem>>, vector<8x32xf32>,
    %c0_15 = arith.constant 0 : index
    %c0_16 = arith.constant 0 : index
    %22 = vector.load %arg12[%c0_15, %c0_16] : memref<32x32xf32, #tpu.memory_space<vmem>>, vector<32x32xf32>
    %c0_17 = arith.constant 0 : index
    %c0_18 = arith.constant 0 : index
    %c0_19 = arith.constant 0 : index
    %23 = vector.load %arg4[%c0_17, %c0_18, %c0_19] : memref<2x32x96xf32, #tpu.memory_space<vmem>>, vector<1x32x96xf32>
    %24 = vector.shape_cast %23 : vector<1x32x96xf32> to vector<32x96xf32>
    %c0_20 = arith.constant 0 : index
    %c0_21 = arith.constant 0 : index
    %c0_22 = arith.constant 0 : index
    %25 = vector.load %arg5[%c0_20, %c0_21, %c0_22] : memref<2x1x96xf32, #tpu.memory_space<vmem>>, vector<1x1x96xf32>
    %26 = vector.shape_cast %25 : vector<1x1x96xf32> to vector<1x96xf32>
    %c0_23 = arith.constant 0 : index
    %c0_24 = arith.constant 0 : index
    %c0_25 = arith.constant 0 : index
    %27 = vector.load %arg6[%c0_23, %c0_24, %c0_25] : memref<2x32x32xf32, #tpu.memory_space<vmem>>, vector<1x32x32xf32>
    %28 = vector.shape_cast %27 : vector<1x32x32xf32> to vector<32x32xf32>
    %c0_26 = arith.constant 0 : index
    %c0_27 = arith.constant 0 : index
    %c0_28 = arith.constant 0 : index
    %29 = vector.load %arg7[%c0_26, %c0_27, %c0_28] : memref<2x32x256xf32, #tpu.memory_space<vmem>>, vector<1x32x256xf32>
    %30 = vector.shape_cast %29 : vector<1x32x256xf32> to vector<32x256xf32>
    %c0_29 = arith.constant 0 : index
    %c0_30 = arith.constant 0 : index
    %c0_31 = arith.constant 0 : index
    %31 = vector.load %arg8[%c0_29, %c0_30, %c0_31] : memref<2x1x256xf32, #tpu.memory_space<vmem>>, vector<1x1x256xf32>
    %32 = vector.shape_cast %31 : vector<1x1x256xf32> to vector<1x256xf32>
    %c0_32 = arith.constant 0 : index
    %c0_33 = arith.constant 0 : index
    %c0_34 = arith.constant 0 : index
    %33 = vector.load %arg9[%c0_32, %c0_33, %c0_34] : memref<2x256x32xf32, #tpu.memory_space<vmem>>, vector<1x256x32xf32>
    %34 = vector.shape_cast %33 : vector<1x256x32xf32> to vector<256x32xf32>
    %c0_35 = arith.constant 0 : index
    %c0_36 = arith.constant 0 : index
    %c0_37 = arith.constant 0 : index
    %35 = vector.load %arg10[%c0_35, %c0_36, %c0_37] : memref<2x6x32xf32, #tpu.memory_space<vmem>>, vector<1x6x32xf32>
    %36 = vector.shape_cast %35 : vector<1x6x32xf32> to vector<6x32xf32>
    %37 = vector.extract_strided_slice %36 {offsets = [0, 0], sizes = [1, 32], strides = [1, 1]} : vector<6x32xf32> to vector<1x32xf32>
    %38 = vector.extract_strided_slice %36 {offsets = [1, 0], sizes = [1, 32], strides = [1, 1]} : vector<6x32xf32> to vector<1x32xf32>
    %39 = vector.extract_strided_slice %36 {offsets = [2, 0], sizes = [1, 32], strides = [1, 1]} : vector<6x32xf32> to vector<1x32xf32>
    %40 = vector.extract_strided_slice %36 {offsets = [3, 0], sizes = [1, 32], strides = [1, 1]} : vector<6x32xf32> to vector<1x32xf32>
    %41 = vector.extract_strided_slice %36 {offsets = [4, 0], sizes = [1, 32], strides = [1, 1]} : vector<6x32xf32> to vector<1x32xf32>
    %42 = vector.extract_strided_slice %36 {offsets = [5, 0], sizes = [1, 32], strides = [1, 1]} : vector<6x32xf32> to vector<1x32xf32>
    %cst_38 = arith.constant dense<0.000000e+00> : vector<32xf32>
    %43 = vector.multi_reduction <add>, %22, %cst_38 [1] : vector<32x32xf32> to vector<32xf32>
    %44 = vector.shape_cast %43 : vector<32xf32> to vector<32x1xf32>
    %cst_39 = arith.constant 3.200000e+01 : f32
    %45 = vector.broadcast %cst_39 : f32 to vector<32x1xf32>
    %46 = arith.divf %44, %45 : vector<32x1xf32>
    %47 = vector.broadcast %46 : vector<32x1xf32> to vector<32x32xf32>
    %48 = arith.subf %22, %47 : vector<32x32xf32>
    %49 = arith.mulf %48, %48 : vector<32x32xf32>
    %cst_40 = arith.constant dense<0.000000e+00> : vector<32xf32>
    %50 = vector.multi_reduction <add>, %49, %cst_40 [1] : vector<32x32xf32> to vector<32xf32>
    %51 = vector.shape_cast %50 : vector<32xf32> to vector<32x1xf32>
    %cst_41 = arith.constant 3.200000e+01 : f32
    %52 = vector.broadcast %cst_41 : f32 to vector<32x1xf32>
    %53 = arith.divf %51, %52 : vector<32x1xf32>
    %cst_42 = arith.constant 9.99999974E-6 : f32
    %54 = vector.broadcast %cst_42 : f32 to vector<32x1xf32>
    %55 = arith.addf %53, %54 : vector<32x1xf32>
    %56 = math.rsqrt %55 : vector<32x1xf32>
    %57 = vector.broadcast %56 : vector<32x1xf32> to vector<32x32xf32>
    %58 = arith.mulf %48, %57 : vector<32x32xf32>
    %59 = vector.broadcast %37 : vector<1x32xf32> to vector<32x32xf32>
    %60 = arith.mulf %58, %59 : vector<32x32xf32>
    %61 = vector.broadcast %38 : vector<1x32xf32> to vector<32x32xf32>
    %62 = arith.addf %60, %61 : vector<32x32xf32>
    %cst_43 = arith.constant dense<0.000000e+00> : vector<32x96xf32>
    %63 = tpu.matmul %62, %24, %cst_43 {dimension_numbers = #tpu.dot_dimension_numbers<[1], [0], [0], [1], [0, 0, 1, 1], [], []>} : vector<32x32xf32>, vector<32x96xf32>, vector<32x96xf32> -> vector<32x96xf32>
    %64 = vector.broadcast %26 : vector<1x96xf32> to vector<32x96xf32>
    %65 = arith.addf %63, %64 : vector<32x96xf32>
    %66 = vector.extract_strided_slice %65 {offsets = [0, 0], sizes = [16, 32], strides = [1, 1]} : vector<32x96xf32> to vector<16x32xf32>
    %67 = vector.extract_strided_slice %65 {offsets = [0, 32], sizes = [16, 32], strides = [1, 1]} : vector<32x96xf32> to vector<16x32xf32>
    %68 = vector.extract_strided_slice %65 {offsets = [0, 64], sizes = [16, 32], strides = [1, 1]} : vector<32x96xf32> to vector<16x32xf32>
    %cst_44 = arith.constant dense<0.000000e+00> : vector<16x16xf32>
    %69 = tpu.matmul %66, %67, %cst_44 {dimension_numbers = #tpu.dot_dimension_numbers<[1], [1], [0], [0], [0, 0, 1, 0], [], []>} : vector<16x32xf32>, vector<16x32xf32>, vector<16x16xf32> -> vector<16x16xf32>
    %cst_45 = arith.constant 0.176776692 : f32
    %70 = vector.broadcast %cst_45 : f32 to vector<16x16xf32>
    %71 = arith.mulf %69, %70 : vector<16x16xf32>
    %72 = vector.broadcast %5 : vector<1x16xf32> to vector<16x16xf32>
    %73 = arith.addf %71, %72 : vector<16x16xf32>
    %cst_46 = arith.constant dense<0xFF800000> : vector<16xf32>
    %74 = vector.multi_reduction <maximumf>, %73, %cst_46 [1] : vector<16x16xf32> to vector<16xf32>
    %75 = vector.shape_cast %74 : vector<16xf32> to vector<16x1xf32>
    %76 = vector.broadcast %75 : vector<16x1xf32> to vector<16x16xf32>
    %77 = arith.subf %73, %76 : vector<16x16xf32>
    %78 = math.exp %77 : vector<16x16xf32>
    %cst_47 = arith.constant dense<0.000000e+00> : vector<16xf32>
    %79 = vector.multi_reduction <add>, %78, %cst_47 [1] : vector<16x16xf32> to vector<16xf32>
    %80 = vector.shape_cast %79 : vector<16xf32> to vector<16x1xf32>
    %81 = tpu.reciprocal %80 {approx = true} : vector<16x1xf32> -> vector<16x1xf32>
    %82 = vector.broadcast %81 : vector<16x1xf32> to vector<16x16xf32>
    %83 = arith.mulf %78, %82 : vector<16x16xf32>
    %cst_48 = arith.constant dense<0.000000e+00> : vector<16x32xf32>
    %84 = tpu.matmul %83, %68, %cst_48 {dimension_numbers = #tpu.dot_dimension_numbers<[1], [0], [0], [1], [0, 0, 1, 1], [], []>} : vector<16x16xf32>, vector<16x32xf32>, vector<16x32xf32> -> vector<16x32xf32>
    %c0_49 = arith.constant 0 : index
    %c0_50 = arith.constant 0 : index
    %85 = vector.load %arg13[%c0_49, %c0_50] : memref<32x32xf32, #tpu.memory_space<vmem>>, vector<16x32xf32>
    tpu.vector_store %arg13[%c0_49, %c0_50], %84 {strides = array<i32>} : memref<32x32xf32, #tpu.memory_space<vmem>>, vector<16x32xf32>,
    %86 = vector.extract_strided_slice %65 {offsets = [16, 0], sizes = [16, 32], strides = [1, 1]} : vector<32x96xf32> to vector<16x32xf32>
    %87 = vector.extract_strided_slice %65 {offsets = [16, 32], sizes = [16, 32], strides = [1, 1]} : vector<32x96xf32> to vector<16x32xf32>
    %88 = vector.extract_strided_slice %65 {offsets = [16, 64], sizes = [16, 32], strides = [1, 1]} : vector<32x96xf32> to vector<16x32xf32>
    %cst_51 = arith.constant dense<0.000000e+00> : vector<16x16xf32>
    %89 = tpu.matmul %86, %87, %cst_51 {dimension_numbers = #tpu.dot_dimension_numbers<[1], [1], [0], [0], [0, 0, 1, 0], [], []>} : vector<16x32xf32>, vector<16x32xf32>, vector<16x16xf32> -> vector<16x16xf32>
    %cst_52 = arith.constant 0.176776692 : f32
    %90 = vector.broadcast %cst_52 : f32 to vector<16x16xf32>
    %91 = arith.mulf %89, %90 : vector<16x16xf32>
    %92 = vector.broadcast %5 : vector<1x16xf32> to vector<16x16xf32>
    %93 = arith.addf %91, %92 : vector<16x16xf32>
    %cst_53 = arith.constant dense<0xFF800000> : vector<16xf32>
    %94 = vector.multi_reduction <maximumf>, %93, %cst_53 [1] : vector<16x16xf32> to vector<16xf32>
    %95 = vector.shape_cast %94 : vector<16xf32> to vector<16x1xf32>
    %96 = vector.broadcast %95 : vector<16x1xf32> to vector<16x16xf32>
    %97 = arith.subf %93, %96 : vector<16x16xf32>
    %98 = math.exp %97 : vector<16x16xf32>
    %cst_54 = arith.constant dense<0.000000e+00> : vector<16xf32>
    %99 = vector.multi_reduction <add>, %98, %cst_54 [1] : vector<16x16xf32> to vector<16xf32>
    %100 = vector.shape_cast %99 : vector<16xf32> to vector<16x1xf32>
    %101 = tpu.reciprocal %100 {approx = true} : vector<16x1xf32> -> vector<16x1xf32>
    %102 = vector.broadcast %101 : vector<16x1xf32> to vector<16x16xf32>
    %103 = arith.mulf %98, %102 : vector<16x16xf32>
    %cst_55 = arith.constant dense<0.000000e+00> : vector<16x32xf32>
    %104 = tpu.matmul %103, %88, %cst_55 {dimension_numbers = #tpu.dot_dimension_numbers<[1], [0], [0], [1], [0, 0, 1, 1], [], []>} : vector<16x16xf32>, vector<16x32xf32>, vector<16x32xf32> -> vector<16x32xf32>
    %c16_56 = arith.constant 16 : index
    %c0_57 = arith.constant 0 : index
    %105 = vector.load %arg13[%c16_56, %c0_57] : memref<32x32xf32, #tpu.memory_space<vmem>>, vector<16x32xf32>
    tpu.vector_store %arg13[%c16_56, %c0_57], %104 {strides = array<i32>} : memref<32x32xf32, #tpu.memory_space<vmem>>, vector<16x32xf32>,
    %c0_58 = arith.constant 0 : index
    %c0_59 = arith.constant 0 : index
    %106 = vector.load %arg13[%c0_58, %c0_59] : memref<32x32xf32, #tpu.memory_space<vmem>>, vector<32x32xf32>
    %cst_60 = arith.constant dense<0.000000e+00> : vector<32x32xf32>
    %107 = tpu.matmul %106, %28, %cst_60 {dimension_numbers = #tpu.dot_dimension_numbers<[1], [0], [0], [1], [0, 0, 1, 1], [], []>} : vector<32x32xf32>, vector<32x32xf32>, vector<32x32xf32> -> vector<32x32xf32>
    %108 = vector.broadcast %41 : vector<1x32xf32> to vector<32x32xf32>
    %109 = arith.addf %107, %108 : vector<32x32xf32>
    %110 = arith.addf %22, %109 : vector<32x32xf32>
    %cst_61 = arith.constant dense<0.000000e+00> : vector<32xf32>
    %111 = vector.multi_reduction <add>, %110, %cst_61 [1] : vector<32x32xf32> to vector<32xf32>
    %112 = vector.shape_cast %111 : vector<32xf32> to vector<32x1xf32>
    %cst_62 = arith.constant 3.200000e+01 : f32
    %113 = vector.broadcast %cst_62 : f32 to vector<32x1xf32>
    %114 = arith.divf %112, %113 : vector<32x1xf32>
    %115 = vector.broadcast %114 : vector<32x1xf32> to vector<32x32xf32>
    %116 = arith.subf %110, %115 : vector<32x32xf32>
    %117 = arith.mulf %116, %116 : vector<32x32xf32>
    %cst_63 = arith.constant dense<0.000000e+00> : vector<32xf32>
    %118 = vector.multi_reduction <add>, %117, %cst_63 [1] : vector<32x32xf32> to vector<32xf32>
    %119 = vector.shape_cast %118 : vector<32xf32> to vector<32x1xf32>
    %cst_64 = arith.constant 3.200000e+01 : f32
    %120 = vector.broadcast %cst_64 : f32 to vector<32x1xf32>
    %121 = arith.divf %119, %120 : vector<32x1xf32>
    %cst_65 = arith.constant 9.99999974E-6 : f32
    %122 = vector.broadcast %cst_65 : f32 to vector<32x1xf32>
    %123 = arith.addf %121, %122 : vector<32x1xf32>
    %124 = math.rsqrt %123 : vector<32x1xf32>
    %125 = vector.broadcast %124 : vector<32x1xf32> to vector<32x32xf32>
    %126 = arith.mulf %116, %125 : vector<32x32xf32>
    %127 = vector.broadcast %39 : vector<1x32xf32> to vector<32x32xf32>
    %128 = arith.mulf %126, %127 : vector<32x32xf32>
    %129 = vector.broadcast %40 : vector<1x32xf32> to vector<32x32xf32>
    %130 = arith.addf %128, %129 : vector<32x32xf32>
    %cst_66 = arith.constant dense<0.000000e+00> : vector<32x256xf32>
    %131 = tpu.matmul %130, %30, %cst_66 {dimension_numbers = #tpu.dot_dimension_numbers<[1], [0], [0], [1], [0, 0, 1, 1], [], []>} : vector<32x32xf32>, vector<32x256xf32>, vector<32x256xf32> -> vector<32x256xf32>
    %132 = vector.broadcast %32 : vector<1x256xf32> to vector<32x256xf32>
    %133 = arith.addf %131, %132 : vector<32x256xf32>
    %cst_67 = arith.constant 0.000000e+00 : f32
    %134 = vector.broadcast %cst_67 : f32 to vector<32x256xf32>
    %135 = arith.maximumf %133, %134 : vector<32x256xf32>
    %cst_68 = arith.constant dense<0.000000e+00> : vector<32x32xf32>
    %136 = tpu.matmul %135, %34, %cst_68 {dimension_numbers = #tpu.dot_dimension_numbers<[1], [0], [0], [1], [0, 0, 1, 1], [], []>} : vector<32x256xf32>, vector<256x32xf32>, vector<32x32xf32> -> vector<32x32xf32>
    %137 = vector.broadcast %42 : vector<1x32xf32> to vector<32x32xf32>
    %138 = arith.addf %136, %137 : vector<32x32xf32>
    %139 = arith.addf %110, %138 : vector<32x32xf32>
    %c1_69 = arith.constant 1 : index
    %c0_70 = arith.constant 0 : index
    %c0_71 = arith.constant 0 : index
    %140 = vector.load %arg4[%c1_69, %c0_70, %c0_71] : memref<2x32x96xf32, #tpu.memory_space<vmem>>, vector<1x32x96xf32>
    %141 = vector.shape_cast %140 : vector<1x32x96xf32> to vector<32x96xf32>
    %c1_72 = arith.constant 1 : index
    %c0_73 = arith.constant 0 : index
    %c0_74 = arith.constant 0 : index
    %142 = vector.load %arg5[%c1_72, %c0_73, %c0_74] : memref<2x1x96xf32, #tpu.memory_space<vmem>>, vector<1x1x96xf32>
    %143 = vector.shape_cast %142 : vector<1x1x96xf32> to vector<1x96xf32>
    %c1_75 = arith.constant 1 : index
    %c0_76 = arith.constant 0 : index
    %c0_77 = arith.constant 0 : index
    %144 = vector.load %arg6[%c1_75, %c0_76, %c0_77] : memref<2x32x32xf32, #tpu.memory_space<vmem>>, vector<1x32x32xf32>
    %145 = vector.shape_cast %144 : vector<1x32x32xf32> to vector<32x32xf32>
    %c1_78 = arith.constant 1 : index
    %c0_79 = arith.constant 0 : index
    %c0_80 = arith.constant 0 : index
    %146 = vector.load %arg7[%c1_78, %c0_79, %c0_80] : memref<2x32x256xf32, #tpu.memory_space<vmem>>, vector<1x32x256xf32>
    %147 = vector.shape_cast %146 : vector<1x32x256xf32> to vector<32x256xf32>
    %c1_81 = arith.constant 1 : index
    %c0_82 = arith.constant 0 : index
    %c0_83 = arith.constant 0 : index
    %148 = vector.load %arg8[%c1_81, %c0_82, %c0_83] : memref<2x1x256xf32, #tpu.memory_space<vmem>>, vector<1x1x256xf32>
    %149 = vector.shape_cast %148 : vector<1x1x256xf32> to vector<1x256xf32>
    %c1_84 = arith.constant 1 : index
    %c0_85 = arith.constant 0 : index
    %c0_86 = arith.constant 0 : index
    %150 = vector.load %arg9[%c1_84, %c0_85, %c0_86] : memref<2x256x32xf32, #tpu.memory_space<vmem>>, vector<1x256x32xf32>
    %151 = vector.shape_cast %150 : vector<1x256x32xf32> to vector<256x32xf32>
    %c1_87 = arith.constant 1 : index
    %c0_88 = arith.constant 0 : index
    %c0_89 = arith.constant 0 : index
    %152 = vector.load %arg10[%c1_87, %c0_88, %c0_89] : memref<2x6x32xf32, #tpu.memory_space<vmem>>, vector<1x6x32xf32>
    %153 = vector.shape_cast %152 : vector<1x6x32xf32> to vector<6x32xf32>
    %154 = vector.extract_strided_slice %153 {offsets = [0, 0], sizes = [1, 32], strides = [1, 1]} : vector<6x32xf32> to vector<1x32xf32>
    %155 = vector.extract_strided_slice %153 {offsets = [1, 0], sizes = [1, 32], strides = [1, 1]} : vector<6x32xf32> to vector<1x32xf32>
    %156 = vector.extract_strided_slice %153 {offsets = [2, 0], sizes = [1, 32], strides = [1, 1]} : vector<6x32xf32> to vector<1x32xf32>
    %157 = vector.extract_strided_slice %153 {offsets = [3, 0], sizes = [1, 32], strides = [1, 1]} : vector<6x32xf32> to vector<1x32xf32>
    %158 = vector.extract_strided_slice %153 {offsets = [4, 0], sizes = [1, 32], strides = [1, 1]} : vector<6x32xf32> to vector<1x32xf32>
    %159 = vector.extract_strided_slice %153 {offsets = [5, 0], sizes = [1, 32], strides = [1, 1]} : vector<6x32xf32> to vector<1x32xf32>
    %cst_90 = arith.constant dense<0.000000e+00> : vector<32xf32>
    %160 = vector.multi_reduction <add>, %139, %cst_90 [1] : vector<32x32xf32> to vector<32xf32>
    %161 = vector.shape_cast %160 : vector<32xf32> to vector<32x1xf32>
    %cst_91 = arith.constant 3.200000e+01 : f32
    %162 = vector.broadcast %cst_91 : f32 to vector<32x1xf32>
    %163 = arith.divf %161, %162 : vector<32x1xf32>
    %164 = vector.broadcast %163 : vector<32x1xf32> to vector<32x32xf32>
    %165 = arith.subf %139, %164 : vector<32x32xf32>
    %166 = arith.mulf %165, %165 : vector<32x32xf32>
    %cst_92 = arith.constant dense<0.000000e+00> : vector<32xf32>
    %167 = vector.multi_reduction <add>, %166, %cst_92 [1] : vector<32x32xf32> to vector<32xf32>
    %168 = vector.shape_cast %167 : vector<32xf32> to vector<32x1xf32>
    %cst_93 = arith.constant 3.200000e+01 : f32
    %169 = vector.broadcast %cst_93 : f32 to vector<32x1xf32>
    %170 = arith.divf %168, %169 : vector<32x1xf32>
    %cst_94 = arith.constant 9.99999974E-6 : f32
    %171 = vector.broadcast %cst_94 : f32 to vector<32x1xf32>
    %172 = arith.addf %170, %171 : vector<32x1xf32>
    %173 = math.rsqrt %172 : vector<32x1xf32>
    %174 = vector.broadcast %173 : vector<32x1xf32> to vector<32x32xf32>
    %175 = arith.mulf %165, %174 : vector<32x32xf32>
    %176 = vector.broadcast %154 : vector<1x32xf32> to vector<32x32xf32>
    %177 = arith.mulf %175, %176 : vector<32x32xf32>
    %178 = vector.broadcast %155 : vector<1x32xf32> to vector<32x32xf32>
    %179 = arith.addf %177, %178 : vector<32x32xf32>
    %cst_95 = arith.constant dense<0.000000e+00> : vector<32x96xf32>
    %180 = tpu.matmul %179, %141, %cst_95 {dimension_numbers = #tpu.dot_dimension_numbers<[1], [0], [0], [1], [0, 0, 1, 1], [], []>} : vector<32x32xf32>, vector<32x96xf32>, vector<32x96xf32> -> vector<32x96xf32>
    %181 = vector.broadcast %143 : vector<1x96xf32> to vector<32x96xf32>
    %182 = arith.addf %180, %181 : vector<32x96xf32>
    %183 = vector.extract_strided_slice %182 {offsets = [0, 0], sizes = [16, 32], strides = [1, 1]} : vector<32x96xf32> to vector<16x32xf32>
    %184 = vector.extract_strided_slice %182 {offsets = [0, 32], sizes = [16, 32], strides = [1, 1]} : vector<32x96xf32> to vector<16x32xf32>
    %185 = vector.extract_strided_slice %182 {offsets = [0, 64], sizes = [16, 32], strides = [1, 1]} : vector<32x96xf32> to vector<16x32xf32>
    %cst_96 = arith.constant dense<0.000000e+00> : vector<16x16xf32>
    %186 = tpu.matmul %183, %184, %cst_96 {dimension_numbers = #tpu.dot_dimension_numbers<[1], [1], [0], [0], [0, 0, 1, 0], [], []>} : vector<16x32xf32>, vector<16x32xf32>, vector<16x16xf32> -> vector<16x16xf32>
    %cst_97 = arith.constant 0.176776692 : f32
    %187 = vector.broadcast %cst_97 : f32 to vector<16x16xf32>
    %188 = arith.mulf %186, %187 : vector<16x16xf32>
    %189 = vector.broadcast %5 : vector<1x16xf32> to vector<16x16xf32>
    %190 = arith.addf %188, %189 : vector<16x16xf32>
    %cst_98 = arith.constant dense<0xFF800000> : vector<16xf32>
    %191 = vector.multi_reduction <maximumf>, %190, %cst_98 [1] : vector<16x16xf32> to vector<16xf32>
    %192 = vector.shape_cast %191 : vector<16xf32> to vector<16x1xf32>
    %193 = vector.broadcast %192 : vector<16x1xf32> to vector<16x16xf32>
    %194 = arith.subf %190, %193 : vector<16x16xf32>
    %195 = math.exp %194 : vector<16x16xf32>
    %cst_99 = arith.constant dense<0.000000e+00> : vector<16xf32>
    %196 = vector.multi_reduction <add>, %195, %cst_99 [1] : vector<16x16xf32> to vector<16xf32>
    %197 = vector.shape_cast %196 : vector<16xf32> to vector<16x1xf32>
    %198 = tpu.reciprocal %197 {approx = true} : vector<16x1xf32> -> vector<16x1xf32>
    %199 = vector.broadcast %198 : vector<16x1xf32> to vector<16x16xf32>
    %200 = arith.mulf %195, %199 : vector<16x16xf32>
    %cst_100 = arith.constant dense<0.000000e+00> : vector<16x32xf32>
    %201 = tpu.matmul %200, %185, %cst_100 {dimension_numbers = #tpu.dot_dimension_numbers<[1], [0], [0], [1], [0, 0, 1, 1], [], []>} : vector<16x16xf32>, vector<16x32xf32>, vector<16x32xf32> -> vector<16x32xf32>
    %c0_101 = arith.constant 0 : index
    %c0_102 = arith.constant 0 : index
    %202 = vector.load %arg13[%c0_101, %c0_102] : memref<32x32xf32, #tpu.memory_space<vmem>>, vector<16x32xf32>
    tpu.vector_store %arg13[%c0_101, %c0_102], %201 {strides = array<i32>} : memref<32x32xf32, #tpu.memory_space<vmem>>, vector<16x32xf32>,
    %203 = vector.extract_strided_slice %182 {offsets = [16, 0], sizes = [16, 32], strides = [1, 1]} : vector<32x96xf32> to vector<16x32xf32>
    %204 = vector.extract_strided_slice %182 {offsets = [16, 32], sizes = [16, 32], strides = [1, 1]} : vector<32x96xf32> to vector<16x32xf32>
    %205 = vector.extract_strided_slice %182 {offsets = [16, 64], sizes = [16, 32], strides = [1, 1]} : vector<32x96xf32> to vector<16x32xf32>
    %cst_103 = arith.constant dense<0.000000e+00> : vector<16x16xf32>
    %206 = tpu.matmul %203, %204, %cst_103 {dimension_numbers = #tpu.dot_dimension_numbers<[1], [1], [0], [0], [0, 0, 1, 0], [], []>} : vector<16x32xf32>, vector<16x32xf32>, vector<16x16xf32> -> vector<16x16xf32>
    %cst_104 = arith.constant 0.176776692 : f32
    %207 = vector.broadcast %cst_104 : f32 to vector<16x16xf32>
    %208 = arith.mulf %206, %207 : vector<16x16xf32>
    %209 = vector.broadcast %5 : vector<1x16xf32> to vector<16x16xf32>
    %210 = arith.addf %208, %209 : vector<16x16xf32>
    %cst_105 = arith.constant dense<0xFF800000> : vector<16xf32>
    %211 = vector.multi_reduction <maximumf>, %210, %cst_105 [1] : vector<16x16xf32> to vector<16xf32>
    %212 = vector.shape_cast %211 : vector<16xf32> to vector<16x1xf32>
    %213 = vector.broadcast %212 : vector<16x1xf32> to vector<16x16xf32>
    %214 = arith.subf %210, %213 : vector<16x16xf32>
    %215 = math.exp %214 : vector<16x16xf32>
    %cst_106 = arith.constant dense<0.000000e+00> : vector<16xf32>
    %216 = vector.multi_reduction <add>, %215, %cst_106 [1] : vector<16x16xf32> to vector<16xf32>
    %217 = vector.shape_cast %216 : vector<16xf32> to vector<16x1xf32>
    %218 = tpu.reciprocal %217 {approx = true} : vector<16x1xf32> -> vector<16x1xf32>
    %219 = vector.broadcast %218 : vector<16x1xf32> to vector<16x16xf32>
    %220 = arith.mulf %215, %219 : vector<16x16xf32>
    %cst_107 = arith.constant dense<0.000000e+00> : vector<16x32xf32>
    %221 = tpu.matmul %220, %205, %cst_107 {dimension_numbers = #tpu.dot_dimension_numbers<[1], [0], [0], [1], [0, 0, 1, 1], [], []>} : vector<16x16xf32>, vector<16x32xf32>, vector<16x32xf32> -> vector<16x32xf32>
    %c16_108 = arith.constant 16 : index
    %c0_109 = arith.constant 0 : index
    %222 = vector.load %arg13[%c16_108, %c0_109] : memref<32x32xf32, #tpu.memory_space<vmem>>, vector<16x32xf32>
    tpu.vector_store %arg13[%c16_108, %c0_109], %221 {strides = array<i32>} : memref<32x32xf32, #tpu.memory_space<vmem>>, vector<16x32xf32>,
    %c0_110 = arith.constant 0 : index
    %c0_111 = arith.constant 0 : index
    %223 = vector.load %arg13[%c0_110, %c0_111] : memref<32x32xf32, #tpu.memory_space<vmem>>, vector<32x32xf32>
    %cst_112 = arith.constant dense<0.000000e+00> : vector<32x32xf32>
    %224 = tpu.matmul %223, %145, %cst_112 {dimension_numbers = #tpu.dot_dimension_numbers<[1], [0], [0], [1], [0, 0, 1, 1], [], []>} : vector<32x32xf32>, vector<32x32xf32>, vector<32x32xf32> -> vector<32x32xf32>
    %225 = vector.broadcast %158 : vector<1x32xf32> to vector<32x32xf32>
    %226 = arith.addf %224, %225 : vector<32x32xf32>
    %227 = arith.addf %139, %226 : vector<32x32xf32>
    %cst_113 = arith.constant dense<0.000000e+00> : vector<32xf32>
    %228 = vector.multi_reduction <add>, %227, %cst_113 [1] : vector<32x32xf32> to vector<32xf32>
    %229 = vector.shape_cast %228 : vector<32xf32> to vector<32x1xf32>
    %cst_114 = arith.constant 3.200000e+01 : f32
    %230 = vector.broadcast %cst_114 : f32 to vector<32x1xf32>
    %231 = arith.divf %229, %230 : vector<32x1xf32>
    %232 = vector.broadcast %231 : vector<32x1xf32> to vector<32x32xf32>
    %233 = arith.subf %227, %232 : vector<32x32xf32>
    %234 = arith.mulf %233, %233 : vector<32x32xf32>
    %cst_115 = arith.constant dense<0.000000e+00> : vector<32xf32>
    %235 = vector.multi_reduction <add>, %234, %cst_115 [1] : vector<32x32xf32> to vector<32xf32>
    %236 = vector.shape_cast %235 : vector<32xf32> to vector<32x1xf32>
    %cst_116 = arith.constant 3.200000e+01 : f32
    %237 = vector.broadcast %cst_116 : f32 to vector<32x1xf32>
    %238 = arith.divf %236, %237 : vector<32x1xf32>
    %cst_117 = arith.constant 9.99999974E-6 : f32
    %239 = vector.broadcast %cst_117 : f32 to vector<32x1xf32>
    %240 = arith.addf %238, %239 : vector<32x1xf32>
    %241 = math.rsqrt %240 : vector<32x1xf32>
    %242 = vector.broadcast %241 : vector<32x1xf32> to vector<32x32xf32>
    %243 = arith.mulf %233, %242 : vector<32x32xf32>
    %244 = vector.broadcast %156 : vector<1x32xf32> to vector<32x32xf32>
    %245 = arith.mulf %243, %244 : vector<32x32xf32>
    %246 = vector.broadcast %157 : vector<1x32xf32> to vector<32x32xf32>
    %247 = arith.addf %245, %246 : vector<32x32xf32>
    %cst_118 = arith.constant dense<0.000000e+00> : vector<32x256xf32>
    %248 = tpu.matmul %247, %147, %cst_118 {dimension_numbers = #tpu.dot_dimension_numbers<[1], [0], [0], [1], [0, 0, 1, 1], [], []>} : vector<32x32xf32>, vector<32x256xf32>, vector<32x256xf32> -> vector<32x256xf32>
    %249 = vector.broadcast %149 : vector<1x256xf32> to vector<32x256xf32>
    %250 = arith.addf %248, %249 : vector<32x256xf32>
    %cst_119 = arith.constant 0.000000e+00 : f32
    %251 = vector.broadcast %cst_119 : f32 to vector<32x256xf32>
    %252 = arith.maximumf %250, %251 : vector<32x256xf32>
    %cst_120 = arith.constant dense<0.000000e+00> : vector<32x32xf32>
    %253 = tpu.matmul %252, %151, %cst_120 {dimension_numbers = #tpu.dot_dimension_numbers<[1], [0], [0], [1], [0, 0, 1, 1], [], []>} : vector<32x256xf32>, vector<256x32xf32>, vector<32x32xf32> -> vector<32x32xf32>
    %254 = vector.broadcast %159 : vector<1x32xf32> to vector<32x32xf32>
    %255 = arith.addf %253, %254 : vector<32x32xf32>
    %256 = arith.addf %227, %255 : vector<32x32xf32>
    %c0_121 = arith.constant 0 : index
    %c0_122 = arith.constant 0 : index
    %257 = vector.load %arg3[%c0_121, %c0_122] : memref<32x1xf32, #tpu.memory_space<vmem>>, vector<32x1xf32>
    %258 = vector.broadcast %257 : vector<32x1xf32> to vector<32x32xf32>
    %259 = arith.mulf %256, %258 : vector<32x32xf32>
    %c0_123 = arith.constant 0 : index
    %c0_124 = arith.constant 0 : index
    %260 = vector.load %arg11[%c0_123, %c0_124] : memref<32x32xf32, #tpu.memory_space<vmem>>, vector<32x32xf32>
    tpu.vector_store %arg11[%c0_123, %c0_124], %259 {strides = array<i32>} : memref<32x32xf32, #tpu.memory_space<vmem>>, vector<32x32xf32>,
    return
  }
}

</mosaic_0001>

<bundles_post_ra>
// kernel: tpu_custom_call.1
= control target key start
LH: loop header
LB: loop body
LE: loop exit
PB: predicated region body
PF: predicated region fallthrough
CT: control target
= control target key end

     0   :  { %vm47_vm0 = vcmask 261120   ;;  %v1746_v4 = vmov 0.0   ;;  %vm52_vm1 = vcmask 253952   ;;  %vm57_vm2 = vcmask 1046528   ;;  %s2536_s0 = inlined_call_operand.vmem [shape: f32[16,32], index: 0, kind: input, shape index: {}]   ;;  %s2537_s1 = inlined_call_operand.vmem [shape: f32[1,32], index: 1, kind: input, shape index: {}]   ;;  %s2538_s2 = inlined_call_operand.vmem [shape: f32[16,32], index: 2, kind: input, shape index: {}]   ;;  %s2539_s3 = inlined_call_operand.vmem [shape: f32[32,1], index: 3, kind: input, shape index: {}]   ;;  %s2540_s4 = inlined_call_operand.vmem [shape: f32[2,32,96], index: 4, kind: input, shape index: {}]   ;;  %s2541_s5 = inlined_call_operand.vmem [shape: f32[2,1,96], index: 5, kind: input, shape index: {}]   ;;  %s2542_s6 = inlined_call_operand.vmem [shape: f32[2,32,32], index: 6, kind: input, shape index: {}]   ;;  %s2543_s7 = inlined_call_operand.vmem [shape: f32[2,32,256], index: 7, kind: input, shape index: {}]   ;;  %s2544_s8 = inlined_call_operand.vmem [shape: f32[2,1,256], index: 8, kind: input, shape index: {}]   ;;  %s2545_s9 = inlined_call_operand.vmem [shape: f32[2,256,32], index: 9, kind: input, shape index: {}]   ;;  %s2546_s10 = inlined_call_operand.vmem [shape: f32[2,6,32], index: 10, kind: input, shape index: {}]   ;;  %s2547_s11 = inlined_call_operand.hbm [shape: f32[32,32], index: 11, kind: output, shape index: {}]  }
   0x1   :  { %v43_v0 = vld [vmem:[%s2538_s2] sm:$0xff]  ;;  %v44_v1 = vld [vmem:[%s2538_s2 + $0x8] sm:$0xff]  ;;  %50 = vst.msk [vmem:[#allocation2 + $0x10] sm:$0xff] %vm47_vm0, %v1746_v4 }
   0x2   :  { %v45_v2 = vld [vmem:[%s2537_s1] sm:$0x1]  ;;  %v58_v5 = vrot.slane %v43_v0, 1  ;;  %51 = vst.msk [vmem:[#allocation2 + $0x18] sm:$0xff] %vm47_vm0, %v1746_v4  ;;  %v59_v6 = vrot.slane %v44_v1, 1  ;;  %v65_v7 = vld [vmem:[%s2536_s0 + $0x8] sm:$0xff] }
   0x3   :  { %v46_v3 = vadd.f32 %v45_v2, %v43_v0  ;;  %v54_v8 = vld [vmem:[%s2536_s0] sm:$0xff] }
   0x5   :  { %64 = vst.msk [vmem:[#allocation2 + $0x10] sm:$0x1] %vm52_vm1, %v46_v3 }
   0x6   :  { %16 = vsyncpa [#allocation5], 0  ;;  %v60_v9 = vsel %vm57_vm2, %v58_v5, %v59_v6  ;;  %48 = vst.msk [vmem:[#allocation2] sm:$0xff] %vm47_vm0, %v1746_v4  ;;  %v1747_v20 = vmov 32.0   ;;  %v75_v47 = vld [vmem:[%s2540_s4 + $0x18] sm:$0xff]  ;;  %v74_v48 = vld [vmem:[%s2540_s4 + $0x10] sm:$0xff] }
   0x7   :  { %v66_v10 = vadd.f32 %v65_v7, %v60_v9  ;;  %49 = vst.msk [vmem:[#allocation2 + $0x8] sm:$0xff] %vm47_vm0, %v1746_v4  ;;  %v62_v11 = vadd.f32 %v60_v9, %v54_v8  ;;  %1654 = vrcp.f32 %v1747_v20  ;;  %255 = vmatpush.msra.mxu0 %v75_v47  ;;  %v73_v49 = vld [vmem:[%s2540_s4 + $0x8] sm:$0xff]  ;;  %v72_v50 = vld [vmem:[%s2540_s4] sm:$0xff]  ;;  %s1748_s17 = smov 96   ;;  %vm313_vm2 = vcmask 130048   ;;  %s1750_s18 = smov 64  }
   0x8   :  { %53 = vst.msk [vmem:[#allocation2] sm:$0x1] %vm52_vm1, %v46_v3  ;;  %v1901_v8 = vld [vmem:[%s2546_s10] sm:$0x3f]  ;;  %s1499_s30 = sshll.u32 %s2547_s11, 4  ;;  %s1753_s12 = smov 128   ;;  %s1500_s30 = int_to_ptr.hbm [resolvable:$true] %s1499_s30 }
   0x9   :  { %67 = vst.msk [vmem:[#allocation2 + $0x11] sm:$0xff] %vm47_vm0, %v66_v10  ;;  %256 = vmatpush.msra.mxu0 %v74_v48  ;;  %s1754_s13 = smov 8  }
   0xa   :  { %63 = vst.msk [vmem:[#allocation2 + $0x1] sm:$0xff] %vm47_vm0, %v62_v11 }
   0xb   :  { %257 = vmatpush.msra.mxu0 %v73_v49  ;;  %v1652_v49 = vld [vmem:[%s2541_s5] ss:$0 sm:$0xff] }
   0xd   :  { %v1655_v21 = vpop.eup %1654  ;;  %258 = vmatpush.msra.mxu0 %v72_v50 }
   0xe   :  { %v136_v22 = vmul.f32 32.0, %v1655_v21  ;;  %vm140_vm3 = vweird.f32 %v1655_v21 }
  0x10   :  { %v1836_v12 = vld [vmem:[#allocation2 + $0x10] sm:$0xff]  ;;  %v1844_v16 = vld [vmem:[#allocation2 + $0x18] sm:$0xff]  ;;  %v137_v23 = vsub.f32 1.0, %v136_v22  ;;  %v223_v22 = vperm.slane %v1901_v8, 1 }
  0x11   :  { %v129_v13 = vsel %vm47_vm0, %v1836_v12, 0.0  ;;  %v1840_v14 = vld [vmem:[#allocation2] sm:$0xff]  ;;  %v1846_v17 = vld [vmem:[#allocation2 + $0x8] sm:$0xff]  ;;  %v132_v18 = vsel %vm47_vm0, %v1844_v16, 0.0 }
  0x12   :  { %130 = vadd.xlane.f32.xlu1 %v129_v13  ;;  %v123_v15 = vsel %vm47_vm0, %v1840_v14, 0.0  ;;  %v126_v19 = vsel %vm47_vm0, %v1846_v17, 0.0  ;;  %v138_v24 = vmul.f32 %v1655_v21, %v137_v23 }
  0x13   :  { %124 = vadd.xlane.f32.xlu0 %v123_v15 }
  0x14   :  { %v139_v25 = vadd.f32 %v1655_v21, %v138_v24 }
  0x16   :  { %v1852_v26 = vsel %vm140_vm3, %v1655_v21, %v139_v25 }
  0x1a   :  { %133 = vadd.xlane.f32.xlu1 %v132_v18  ;;  %v218_v18 = vperm.slane %v1901_v8, 0 }
  0x1b   :  { %127 = vadd.xlane.f32.xlu0 %v126_v19 }
  0x85   :  { %v131_v27 = vpop.xlane.xlu1 %130 }
  0x86   :  { %v144_v28 = vmul.f32 %v1852_v26, %v131_v27  ;;  %v125_v29 = vpop.xlane.xlu0 %124 }
  0x87   :  { %v142_v30 = vmul.f32 %v1852_v26, %v125_v29 }
  0x88   :  { %v1857_v31 = vsub.f32 %v1836_v12, %v144_v28 }
  0x89   :  { %v1860_v32 = vsub.f32 %v1840_v14, %v142_v30 }
  0x8a   :  { %v152_v33 = vmul.f32 %v1857_v31, %v1857_v31 }
  0x8b   :  { %v150_v34 = vmul.f32 %v1860_v32, %v1860_v32 }
  0x8c   :  { %v160_v35 = vsel %vm47_vm0, %v152_v33, 0.0 }
  0x8d   :  { %v134_v36 = vpop.xlane.xlu1 %133  ;;  %161 = vadd.xlane.f32.xlu0 %v160_v35  ;;  %v154_v37 = vsel %vm47_vm0, %v150_v34, 0.0 }
  0x8e   :  { %v145_v38 = vmul.f32 %v1852_v26, %v134_v36  ;;  %155 = vadd.xlane.f32.xlu2 %v154_v37  ;;  %v128_v39 = vpop.xlane.xlu0 %127 }
  0x8f   :  { %v143_v40 = vmul.f32 %v1852_v26, %v128_v39 }
  0x90   :  { %v1871_v41 = vsub.f32 %v1844_v16, %v145_v38 }
  0x91   :  { %v1874_v42 = vsub.f32 %v1846_v17, %v143_v40 }
  0x92   :  { %v153_v43 = vmul.f32 %v1871_v41, %v1871_v41 }
  0x93   :  { %v151_v44 = vmul.f32 %v1874_v42, %v1874_v42 }
  0x94   :  { %v163_v45 = vsel %vm47_vm0, %v153_v43, 0.0 }
  0x95   :  { %164 = vadd.xlane.f32.xlu1 %v163_v45  ;;  %v157_v46 = vsel %vm47_vm0, %v151_v44, 0.0 }
  0x96   :  { %158 = vadd.xlane.f32.xlu2 %v157_v46 }
 0x100   :  { %v162_v51 = vpop.xlane.xlu0 %161 }
 0x101   :  { %v156_v52 = vpop.xlane.xlu2 %155  ;;  %v168_v53 = vmul.f32 %v162_v51, %v1852_v26 }
 0x102   :  { %v166_v54 = vmul.f32 %v156_v52, %v1852_v26 }
 0x103   :  { %v172_v55 = vadd.f32 1e-05, %v168_v53 }
 0x104   :  { %v170_v56 = vadd.f32 1e-05, %v166_v54 }
 0x105   :  { %1656 = vrsqrt.f32 %v172_v55  ;;  %vm200_vm7 = vweird.f32 %v172_v55 }
 0x106   :  { %1658 = vrsqrt.f32 %v170_v56  ;;  %vm180_vm5 = vweird.f32 %v170_v56 }
 0x108   :  { %v165_v57 = vpop.xlane.xlu1 %164 }
 0x109   :  { %v169_v58 = vmul.f32 %v165_v57, %v1852_v26  ;;  %v159_v59 = vpop.xlane.xlu2 %158 }
 0x10a   :  { %v167_v60 = vmul.f32 %v159_v59, %v1852_v26 }
 0x10b   :  { %v1657_v61 = vpop.eup %1656  ;;  %v173_v62 = vadd.f32 1e-05, %v169_v58 }
 0x10c   :  { %v1659_v63 = vpop.eup %1658  ;;  %v171_v0 = vadd.f32 1e-05, %v167_v60  ;;  %v195_v2 = vmul.f32 %v1657_v61, %v172_v55  ;;  %vm201_vm8 = vweird.f32 %v1657_v61  ;;  %v39_v60 = vlaneseq }
 0x10d   :  { %v175_v1 = vmul.f32 %v1659_v63, %v170_v56  ;;  %1660 = vrsqrt.f32 %v173_v62  ;;  %vm181_vm4 = vweird.f32 %v1659_v63  ;;  %vm202_vm11 = vmor %vm200_vm7, %vm201_vm8  ;;  %vm210_vm13 = vweird.f32 %v173_v62 }
 0x10e   :  { %1662 = vrsqrt.f32 %v171_v0  ;;  %v196_v5 = vmul.f32 %v1657_v61, %v195_v2  ;;  %vm182_vm6 = vmor %vm180_vm5, %vm181_vm4  ;;  %vm190_vm9 = vweird.f32 %v171_v0 }
 0x10f   :  { %v176_v3 = vmul.f32 %v1659_v63, %v175_v1 }
 0x110   :  { %v197_v11 = vmul.f32 0.5, %v196_v5 }
 0x111   :  { %v177_v4 = vmul.f32 0.5, %v176_v3 }
 0x112   :  { %v198_v23 = vsub.f32 1.5, %v197_v11 }
 0x113   :  { %v1661_v6 = vpop.eup %1660  ;;  %v178_v7 = vsub.f32 1.5, %v177_v4 }
 0x114   :  { %v1663_v9 = vpop.eup %1662  ;;  %v205_v13 = vmul.f32 %v1661_v6, %v173_v62  ;;  %v199_v30 = vmul.f32 %v1657_v61, %v198_v23  ;;  %vm211_vm14 = vweird.f32 %v1661_v6 }
 0x115   :  { %v179_v10 = vmul.f32 %v1659_v63, %v178_v7  ;;  %v185_v15 = vmul.f32 %v1663_v9, %v171_v0  ;;  %vm191_vm10 = vweird.f32 %v1663_v9  ;;  %vm212_vm15 = vmor %vm210_vm13, %vm211_vm14 }
 0x116   :  { %v206_v24 = vmul.f32 %v1661_v6, %v205_v13  ;;  %vm192_vm12 = vmor %vm190_vm9, %vm191_vm10  ;;  %v203_v36 = vsel %vm202_vm11, %v1657_v61, %v199_v30  ;;  %v40_v61 = vand.u32 127, %v39_v60 }
 0x117   :  { %v183_v19 = vsel %vm182_vm6, %v1659_v63, %v179_v10  ;;  %v186_v20 = vmul.f32 %v1663_v9, %v185_v15  ;;  %v216_v40 = vmul.f32 %v203_v36, %v1857_v31  ;;  %v1749_v63 = vmov -1e+30  }
 0x118   :  { %v214_v21 = vmul.f32 %v183_v19, %v1860_v32  ;;  %v207_v33 = vmul.f32 0.5, %v206_v24  ;;  %vm41_vm1 = vcmp.lt.s32.totalorder %v40_v61, 9 }
 0x119   :  { %v187_v25 = vmul.f32 0.5, %v186_v20  ;;  %v221_v44 = vmul.f32 %v218_v18, %v216_v40  ;;  %v1938_v0 = vsel %vm41_vm1, 0.0, %v1749_v63  ;;  %v79_v63 = vld [vmem:[%s2542_s6 + $0x10] sm:$0xff] }
 0x11a   :  { %v219_v27 = vmul.f32 %v218_v18, %v214_v21  ;;  %v208_v37 = vsub.f32 1.5, %v207_v33 }
 0x11b   :  { %v188_v28 = vsub.f32 1.5, %v187_v25  ;;  %v226_v46 = vadd.f32 %v223_v22, %v221_v44 }
 0x11c   :  { %v224_v29 = vadd.f32 %v223_v22, %v219_v27  ;;  %v209_v43 = vmul.f32 %v1661_v6, %v208_v37 }
 0x11d   :  { %v189_v34 = vmul.f32 %v1663_v9, %v188_v28 }
 0x11e   :  { %1511 = vmatmul.msk.f32.vlgmr.msra.gmra.mxu0 %vm47_vm0, %v224_v29  ;;  %v213_v45 = vsel %vm212_vm15, %v1661_v6, %v209_v43 }
 0x11f   :  { %v193_v32 = vsel %vm192_vm12, %v1663_v9, %v189_v34  ;;  %v217_v47 = vmul.f32 %v213_v45, %v1871_v41 }
 0x120   :  { %v215_v35 = vmul.f32 %v193_v32, %v1874_v42 }
 0x121   :  { %v222_v42 = vmul.f32 %v218_v18, %v217_v47 }
 0x122   :  { %v220_v38 = vmul.f32 %v218_v18, %v215_v35 }
 0x123   :  { %v227_v48 = vadd.f32 %v223_v22, %v222_v42 }
 0x124   :  { %v225_v39 = vadd.f32 %v223_v22, %v220_v38 }
 0x126   :  { %1512 = vmatmul.msk.f32.gmra.mxu0 %vm47_vm0, %v225_v39 }
 0x12e   :  { %1513 = vmatmul.msk.f32.gmra.mxu0 %vm47_vm0, %v226_v46 }
 0x136   :  { %1514 = vmatmul.msk.f32.gmra.mxu0 %vm47_vm0, %v227_v48 }
 0x19b   :  { %v260_v31 = vpop.f32.mrf.mxu0 }
 0x19c   :  { %v261_v50 = vadd.f32 %v1652_v49, %v260_v31 }
 0x19e   :  { %274 = vrot.lane.b32.xlu0 %v261_v50, %s1748_s17 }
 0x1a3   :  { %v263_v51 = vpop.f32.mrf.mxu0 }
 0x1a4   :  { %v264_v52 = vadd.f32 %v1652_v49, %v263_v51 }
 0x1a6   :  { %276 = vrot.lane.b32.xlu2 %v264_v52, %s1748_s17  ;;  %v1629_v21 = vpack.i.bf16 %v261_v50, %v264_v52 }
 0x1ab   :  { %v266_v41 = vpop.f32.mrf.mxu0 }
 0x1ac   :  { %v1918_v53 = vadd.f32 %v1652_v49, %v266_v41 }
 0x1ae   :  { %375 = vrot.lane.b32.xlu2 %v1918_v53, %s1748_s17 }
 0x1b3   :  { %v269_v54 = vpop.f32.mrf.mxu0 }
 0x1b4   :  { %v1922_v55 = vadd.f32 %v1652_v49, %v269_v54 }
 0x1b6   :  { %377 = vrot.lane.b32.xlu1 %v1922_v55, %s1748_s17  ;;  %v1634_v37 = vpack.i.bf16 %v1918_v53, %v1922_v55 }
 0x200   :  { %v277_v56 = vpop.permute.xlu2 %276 }
 0x201   :  { %1515 = vmatpush.xpose.msk.msra.mxu1 %vm47_vm0, %v277_v56  ;;  %1618 = vmatpush.xpose.msk.msra.mxu2 %vm47_vm0, %v277_v56 }
 0x208   :  { %v376_v59 = vpop.permute.xlu2 %375 }
 0x210   :  { %v275_v57 = vpop.permute.xlu0 %274 }
 0x211   :  { %1516 = vmatpush.xpose.msk.msra.mxu1 %vm47_vm0, %v275_v57  ;;  %1619 = vmatpush.xpose.msk.msra.mxu2 %vm47_vm0, %v275_v57 }
 0x214   :  { %1517 = vmatmul.msk.f32.vlgmr.msra.gmra.mxu1 %vm47_vm0, %v261_v50  ;;  %1518 = vmatmul.msk.f32.vlgmr.msra.gmra.mxu2 %vm47_vm0, %v264_v52 }
 0x228   :  { %v378_v58 = vpop.permute.xlu1 %377 }
 0x229   :  { %1521 = vmatpush.xpose.msk.msra.mxu3 %vm47_vm0, %v378_v58 }
 0x22d   :  { %1522 = vmatpush.xpose.msk.msra.mxu3 %vm47_vm0, %v376_v59 }
 0x230   :  { %1523 = vmatmul.msk.f32.vlgmr.msra.gmra.mxu3 %vm47_vm0, %v1918_v53 }
 0x238   :  { %1524 = vmatmul.msk.f32.gmra.mxu3 %vm47_vm0, %v1922_v55 }
 0x291   :  { %v303_v62 = vpop.f32.mrf.mxu1 }
 0x292   :  { %v309_v1 = vmul.f32 0.17677669, %v303_v62  ;;  %v80_v62 = vld [vmem:[%s2542_s6 + $0x18] sm:$0xff] }
 0x293   :  { %502 = vmatpush.msrb.mxu1 %v80_v62 }
 0x294   :  { %v311_v2 = vadd.f32 %v309_v1, %v1938_v0  ;;  %v78_v1 = vld [vmem:[%s2542_s6 + $0x8] sm:$0xff] }
 0x295   :  { %503 = vmatpush.msrb.mxu1 %v79_v63 }
 0x296   :  { %v314_v3 = vsel %vm313_vm2, %v311_v2, -inf }
 0x297   :  { %v306_v4 = vpop.f32.mrf.mxu2  ;;  %315 = vmax.xlane.f32.xlu0 %v314_v3  ;;  %504 = vmatpush.msrb.mxu1 %v78_v1 }
 0x298   :  { %v310_v5 = vmul.f32 0.17677669, %v306_v4 }
 0x29a   :  { %v312_v6 = vadd.f32 %v310_v5, %v1938_v0 }
 0x29c   :  { %v317_v7 = vsel %vm313_vm2, %v312_v6, -inf }
 0x29d   :  { %318 = vmax.xlane.f32.xlu2 %v317_v7 }
 0x2b3   :  { %v404_v9 = vpop.f32.mrf.mxu3 }
 0x2b4   :  { %v410_v10 = vmul.f32 0.17677669, %v404_v9 }
 0x2b6   :  { %v412_v11 = vadd.f32 %v410_v10, %v1938_v0 }
 0x2b8   :  { %v414_v13 = vsel %vm313_vm2, %v412_v11, -inf }
 0x2b9   :  { %415 = vmax.xlane.f32.xlu1 %v414_v13  ;;  %v477_v13 = vperm.slane %v1901_v8, 4 }
 0x2bb   :  { %v407_v15 = vpop.f32.mrf.mxu3 }
 0x2bc   :  { %v411_v18 = vmul.f32 0.17677669, %v407_v15 }
 0x2be   :  { %v413_v19 = vadd.f32 %v411_v18, %v1938_v0 }
 0x2c0   :  { %v417_v20 = vsel %vm313_vm2, %v413_v19, -inf }
 0x2c1   :  { %418 = vmax.xlane.f32.xlu0 %v417_v20 }
 0x2d2   :  { %1630 = vrot.lane.b32.xlu1 %v1629_v21, %s1750_s18 }
 0x30a   :  { %v316_v22 = vpop.xlane.xlu0 %315 }
 0x30b   :  { %v320_v23 = vsub.f32 %v311_v2, %v316_v22  ;;  %v77_v2 = vld [vmem:[%s2542_s6] sm:$0xff] }
 0x30c   :  { %505 = vmatpush.msrb.mxu1 %v77_v2 }
 0x30d   :  { %v322_v24 = vmul.f32 1.442695, %v320_v23 }
 0x30f   :  { %1664 = vpow2.f32 %v322_v24 }
 0x310   :  { %v319_v25 = vpop.xlane.xlu2 %318 }
 0x311   :  { %v321_v27 = vsub.f32 %v312_v6, %v319_v25 }
 0x313   :  { %v324_v28 = vmul.f32 1.442695, %v321_v27 }
 0x315   :  { %v1665_v29 = vpop.eup %1664  ;;  %1666 = vpow2.f32 %v324_v28 }
 0x316   :  { %v326_v30 = vsel %vm313_vm2, %v1665_v29, 0.0 }
 0x317   :  { %327 = vadd.xlane.f32.xlu2 %v326_v30 }
 0x31b   :  { %v1667_v33 = vpop.eup %1666 }
 0x31c   :  { %v329_v34 = vsel %vm313_vm2, %v1667_v33, 0.0 }
 0x31d   :  { %330 = vadd.xlane.f32.xlu0 %v329_v34 }
 0x32c   :  { %v416_v32 = vpop.xlane.xlu1 %415 }
 0x32d   :  { %v420_v35 = vsub.f32 %v412_v11, %v416_v32 }
 0x32f   :  { %v422_v36 = vmul.f32 1.442695, %v420_v35 }
 0x331   :  { %1668 = vpow2.f32 %v422_v36  ;;  %1635 = vrot.lane.b32.xlu0 %v1634_v37, %s1750_s18 }
 0x334   :  { %v419_v38 = vpop.xlane.xlu0 %418 }
 0x335   :  { %v421_v39 = vsub.f32 %v413_v19, %v419_v38 }
 0x337   :  { %v1669_v40 = vpop.eup %1668  ;;  %v424_v43 = vmul.f32 1.442695, %v421_v39 }
 0x338   :  { %v426_v44 = vsel %vm313_vm2, %v1669_v40, 0.0 }
 0x339   :  { %1670 = vpow2.f32 %v424_v43  ;;  %427 = vadd.xlane.f32.xlu2 %v426_v44 }
 0x33f   :  { %v1671_v45 = vpop.eup %1670 }
 0x340   :  { %v429_v46 = vsel %vm313_vm2, %v1671_v45, 0.0 }
 0x341   :  { %430 = vadd.xlane.f32.xlu2 %v429_v46 }
 0x344   :  { %v1631_v47 = vpop.permute.xlu1 %1630 }
 0x345   :  { %v1632_v42 = vunpack.i.l.bf16 %v1631_v47  ;;  %v1633_v48 = vunpack.i.h.bf16 %v1631_v47 }
 0x347   :  { %362 = vmatpush.msrb.mxu2 %v1632_v42 }
 0x349   :  { %363 = vmatpush.msrb.mxu2 %v1633_v48 }
 0x38a   :  { %v328_v49 = vpop.xlane.xlu2 %327 }
 0x38b   :  { %1672 = vrcp.f32 %v328_v49 }
 0x390   :  { %v331_v31 = vpop.xlane.xlu0 %330 }
 0x391   :  { %v1673_v50 = vpop.eup %1672  ;;  %1674 = vrcp.f32 %v331_v31 }
 0x392   :  { %v334_v51 = vmul.f32 %v1673_v50, %v1665_v29 }
 0x394   :  { %1519 = vmatmul.msk.f32.vlgmr.msrb.gmra.mxu2 %vm313_vm2, %v334_v51  ;;  %v87_v51 = vld [vmem:[%s2543_s7 + $0x30] sm:$0xff] }
 0x395   :  { %650 = vmatpush.msrb.mxu3 %v87_v51  ;;  %v116_v51 = vld [vmem:[%s2545_s9 + $0xd0] sm:$0xff] }
 0x397   :  { %v1675_v52 = vpop.eup %1674 }
 0x398   :  { %v335_v41 = vmul.f32 %v1675_v52, %v1667_v33  ;;  %v88_v52 = vld [vmem:[%s2543_s7 + $0x38] sm:$0xff] }
 0x39c   :  { %1520 = vmatmul.msk.f32.gmra.mxu2 %vm313_vm2, %v335_v41  ;;  %v85_v41 = vld [vmem:[%s2543_s7 + $0x20] sm:$0xff] }
 0x39d   :  { %651 = vmatpush.msrb.mxu3 %v85_v41  ;;  %v99_v41 = vld [vmem:[%s2545_s9 + $0x48] sm:$0xff] }
 0x3a3   :  { %v1636_v53 = vpop.permute.xlu0 %1635 }
 0x3a4   :  { %v1637_v54 = vunpack.i.l.bf16 %v1636_v53  ;;  %v1638_v55 = vunpack.i.h.bf16 %v1636_v53  ;;  %v86_v53 = vld [vmem:[%s2543_s7 + $0x28] sm:$0xff] }
 0x3a6   :  { %462 = vmatpush.msra.mxu2 %v1637_v54  ;;  %v83_v54 = vld [vmem:[%s2543_s7 + $0x10] sm:$0xff] }
 0x3a7   :  { %652 = vmatpush.msrb.mxu3 %v83_v54 }
 0x3a8   :  { %463 = vmatpush.msra.mxu2 %v1638_v55  ;;  %v84_v55 = vld [vmem:[%s2543_s7 + $0x18] sm:$0xff] }
 0x3aa   :  { %679 = vmatpush.msrb.mxu2 %v88_v52 }
 0x3ac   :  { %v428_v56 = vpop.xlane.xlu2 %427  ;;  %680 = vmatpush.msrb.mxu2 %v86_v53  ;;  %v115_v53 = vld [vmem:[%s2545_s9 + $0xc8] sm:$0xff] }
 0x3ad   :  { %1676 = vrcp.f32 %v428_v56  ;;  %v81_v56 = vld [vmem:[%s2543_s7] sm:$0xff] }
 0x3ae   :  { %681 = vmatpush.msrb.mxu2 %v84_v55  ;;  %653 = vmatpush.msrb.mxu3 %v81_v56  ;;  %v98_v55 = vld [vmem:[%s2545_s9 + $0x40] sm:$0xff] }
 0x3af   :  { %v114_v56 = vld [vmem:[%s2545_s9 + $0xc0] sm:$0xff] }
 0x3b3   :  { %v1677_v57 = vpop.eup %1676 }
 0x3b4   :  { %v434_v58 = vmul.f32 %v1677_v57, %v1669_v40  ;;  %v431_v59 = vpop.xlane.xlu2 %430  ;;  %v82_v57 = vld [vmem:[%s2543_s7 + $0x8] sm:$0xff] }
 0x3b5   :  { %1678 = vrcp.f32 %v431_v59  ;;  %682 = vmatpush.msrb.mxu2 %v82_v57 }
 0x3b6   :  { %1525 = vmatmul.msk.f32.vlgmr.msra.gmra.mxu2 %vm313_vm2, %v434_v58 }
 0x3bb   :  { %v1679_v60 = vpop.eup %1678 }
 0x3bc   :  { %v435_v61 = vmul.f32 %v1679_v60, %v1671_v45 }
 0x3be   :  { %1526 = vmatmul.msk.f32.gmra.mxu2 %vm313_vm2, %v435_v61 }
 0x417   :  { %v365_v3 = vpop.f32.mrf.mxu2 }
 0x418   :  { %371 = vst.msk [vmem:[#allocation3] sm:$0xff] %vm47_vm0, %v365_v3 }
 0x41f   :  { %v368_v4 = vpop.f32.mrf.mxu2  ;;  %v473_v5 = vld [vmem:[#allocation3] sm:$0xff] }
 0x420   :  { %372 = vst.msk [vmem:[#allocation3 + $0x8] sm:$0xff] %vm47_vm0, %v368_v4  ;;  %1527 = vmatmul.msk.f32.vlgmr.msrb.gmra.mxu1 %vm47_vm0, %v473_v5 }
 0x427   :  { %v474_v6 = vld [vmem:[#allocation3 + $0x8] sm:$0xff] }
 0x428   :  { %1528 = vmatmul.msk.f32.gmra.mxu1 %vm47_vm0, %v474_v6 }
 0x439   :  { %v465_v7 = vpop.f32.mrf.mxu2 }
 0x43a   :  { %471 = vst.msk [vmem:[#allocation3 + $0x10] sm:$0xff] %vm47_vm0, %v465_v7 }
 0x441   :  { %v468_v9 = vpop.f32.mrf.mxu2  ;;  %v475_v10 = vld [vmem:[#allocation3 + $0x10] sm:$0xff] }
 0x442   :  { %472 = vst.msk [vmem:[#allocation3 + $0x18] sm:$0xff] %vm47_vm0, %v468_v9  ;;  %1529 = vmatmul.msk.f32.gmra.mxu1 %vm47_vm0, %v475_v10  ;;  %v2052_v10 = vperm.slane %v1901_v8, 2 }
 0x449   :  { %v476_v11 = vld [vmem:[#allocation3 + $0x18] sm:$0xff] }
 0x44a   :  { %1530 = vmatmul.msk.f32.gmra.mxu1 %vm47_vm0, %v476_v11 }
 0x49d   :  { %v507_v15 = vpop.f32.mrf.mxu1 }
 0x49e   :  { %v508_v18 = vadd.f32 %v507_v15, %v477_v13 }
 0x4a0   :  { %v1982_v19 = vadd.f32 %v508_v18, %v1840_v14  ;;  %v2055_v18 = vperm.slane %v1901_v8, 3 }
 0x4a2   :  { %v523_v20 = vsel %vm47_vm0, %v1982_v19, 0.0 }
 0x4a3   :  { %524 = vadd.xlane.f32.xlu2 %v523_v20 }
 0x4a5   :  { %v510_v21 = vpop.f32.mrf.mxu1 }
 0x4a6   :  { %v511_v22 = vadd.f32 %v510_v21, %v477_v13 }
 0x4a8   :  { %v1987_v23 = vadd.f32 %v511_v22, %v1846_v17 }
 0x4aa   :  { %v526_v24 = vsel %vm47_vm0, %v1987_v23, 0.0 }
 0x4ab   :  { %527 = vadd.xlane.f32.xlu1 %v526_v24 }
 0x4bf   :  { %v513_v25 = vpop.f32.mrf.mxu1 }
 0x4c0   :  { %v514_v27 = vadd.f32 %v513_v25, %v477_v13 }
 0x4c2   :  { %v1992_v28 = vadd.f32 %v514_v27, %v1836_v12 }
 0x4c4   :  { %v529_v14 = vsel %vm47_vm0, %v1992_v28, 0.0 }
 0x4c5   :  { %530 = vadd.xlane.f32.xlu2 %v529_v14 }
 0x4c7   :  { %v516_v29 = vpop.f32.mrf.mxu1 }
 0x4c8   :  { %v517_v30 = vadd.f32 %v516_v29, %v477_v13 }
 0x4ca   :  { %v1997_v33 = vadd.f32 %v517_v30, %v1844_v16 }
 0x4cc   :  { %v532_v17 = vsel %vm47_vm0, %v1997_v33, 0.0 }
 0x4cd   :  { %533 = vadd.xlane.f32.xlu0 %v532_v17 }
 0x516   :  { %v525_v34 = vpop.xlane.xlu2 %524 }
 0x517   :  { %v535_v32 = vmul.f32 %v525_v34, %v1852_v26 }
 0x519   :  { %v539_v35 = vsub.f32 %v1982_v19, %v535_v32 }
 0x51b   :  { %v543_v12 = vmul.f32 %v539_v35, %v539_v35 }
 0x51d   :  { %v547_v36 = vsel %vm47_vm0, %v543_v12, 0.0  ;;  %v121_v12 = vld [vmem:[%s2545_s9 + $0xf8] sm:$0xff] }
 0x51e   :  { %v528_v37 = vpop.xlane.xlu1 %527  ;;  %548 = vadd.xlane.f32.xlu2 %v547_v36  ;;  %v104_v36 = vld [vmem:[%s2545_s9 + $0x70] sm:$0xff]  ;;  %734 = vmatpush.msra.mxu1 %v121_v12 }
 0x51f   :  { %v536_v38 = vmul.f32 %v528_v37, %v1852_v26  ;;  %v120_v37 = vld [vmem:[%s2545_s9 + $0xf0] sm:$0xff] }
 0x520   :  { %735 = vmatpush.msra.mxu1 %v120_v37 }
 0x521   :  { %v2006_v39 = vsub.f32 %v1987_v23, %v536_v38  ;;  %v103_v38 = vld [vmem:[%s2545_s9 + $0x68] sm:$0xff] }
 0x523   :  { %v544_v16 = vmul.f32 %v2006_v39, %v2006_v39 }
 0x525   :  { %v550_v40 = vsel %vm47_vm0, %v544_v16, 0.0 }
 0x526   :  { %551 = vadd.xlane.f32.xlu2 %v550_v40 }
 0x538   :  { %v531_v43 = vpop.xlane.xlu2 %530 }
 0x539   :  { %v537_v44 = vmul.f32 %v531_v43, %v1852_v26  ;;  %v102_v43 = vld [vmem:[%s2545_s9 + $0x60] sm:$0xff] }
 0x53b   :  { %v2013_v45 = vsub.f32 %v1992_v28, %v537_v44  ;;  %v118_v44 = vld [vmem:[%s2545_s9 + $0xe0] sm:$0xff] }
 0x53d   :  { %v545_v46 = vmul.f32 %v2013_v45, %v2013_v45 }
 0x53f   :  { %v553_v47 = vsel %vm47_vm0, %v545_v46, 0.0 }
 0x540   :  { %554 = vadd.xlane.f32.xlu2 %v553_v47  ;;  %v534_v42 = vpop.xlane.xlu0 %533 }
 0x541   :  { %v538_v48 = vmul.f32 %v534_v42, %v1852_v26  ;;  %v101_v42 = vld [vmem:[%s2545_s9 + $0x58] sm:$0xff] }
 0x543   :  { %v2020_v49 = vsub.f32 %v1997_v33, %v538_v48  ;;  %v117_v48 = vld [vmem:[%s2545_s9 + $0xd8] sm:$0xff] }
 0x545   :  { %v546_v31 = vmul.f32 %v2020_v49, %v2020_v49 }
 0x547   :  { %v556_v50 = vsel %vm47_vm0, %v546_v31, 0.0 }
 0x548   :  { %557 = vadd.xlane.f32.xlu2 %v556_v50  ;;  %v100_v50 = vld [vmem:[%s2545_s9 + $0x50] sm:$0xff] }
 0x591   :  { %v549_v58 = vpop.xlane.xlu2 %548 }
 0x592   :  { %v559_v59 = vmul.f32 %v549_v58, %v1852_v26 }
 0x594   :  { %v563_v60 = vadd.f32 1e-05, %v559_v59  ;;  %v97_v59 = vld [vmem:[%s2545_s9 + $0x38] sm:$0xff] }
 0x596   :  { %1680 = vrsqrt.f32 %v563_v60  ;;  %vm573_vm4 = vweird.f32 %v563_v60 }
 0x599   :  { %v552_v61 = vpop.xlane.xlu2 %551 }
 0x59a   :  { %v560_v62 = vmul.f32 %v552_v61, %v1852_v26 }
 0x59c   :  { %v1681_v63 = vpop.eup %1680  ;;  %v564_v1 = vadd.f32 1e-05, %v560_v62 }
 0x59d   :  { %v568_v2 = vmul.f32 %v1681_v63, %v563_v60  ;;  %vm574_vm3 = vweird.f32 %v1681_v63  ;;  %v113_v60 = vld [vmem:[%s2545_s9 + $0xb8] sm:$0xff] }
 0x59e   :  { %1682 = vrsqrt.f32 %v564_v1  ;;  %vm575_vm5 = vmor %vm573_vm4, %vm574_vm3  ;;  %vm583_vm7 = vweird.f32 %v564_v1 }
 0x59f   :  { %v569_v3 = vmul.f32 %v1681_v63, %v568_v2 }
 0x5a1   :  { %v570_v4 = vmul.f32 0.5, %v569_v3 }
 0x5a3   :  { %v571_v5 = vsub.f32 1.5, %v570_v4 }
 0x5a4   :  { %v1683_v6 = vpop.eup %1682 }
 0x5a5   :  { %v572_v7 = vmul.f32 %v1681_v63, %v571_v5  ;;  %v578_v9 = vmul.f32 %v1683_v6, %v564_v1  ;;  %vm584_vm6 = vweird.f32 %v1683_v6  ;;  %v112_v1 = vld [vmem:[%s2545_s9 + $0xb0] sm:$0xff]  ;;  %v95_v5 = vld [vmem:[%s2545_s9 + $0x28] sm:$0xff] }
 0x5a6   :  { %vm585_vm8 = vmor %vm583_vm7, %vm584_vm6 }
 0x5a7   :  { %v576_v11 = vsel %vm575_vm5, %v1681_v63, %v572_v7  ;;  %v579_v13 = vmul.f32 %v1683_v6, %v578_v9  ;;  %v96_v63 = vld [vmem:[%s2545_s9 + $0x30] sm:$0xff] }
 0x5a8   :  { %v607_v15 = vmul.f32 %v576_v11, %v539_v35  ;;  %v105_v35 = vld [vmem:[%s2545_s9 + $0x78] sm:$0xff]  ;;  %v94_v11 = vld [vmem:[%s2545_s9 + $0x20] sm:$0xff] }
 0x5a9   :  { %v580_v20 = vmul.f32 0.5, %v579_v13  ;;  %705 = vmatpush.msrb.mxu0 %v105_v35 }
 0x5aa   :  { %v612_v21 = vmul.f32 %v2052_v10, %v607_v15 }
 0x5ab   :  { %v581_v22 = vsub.f32 1.5, %v580_v20  ;;  %706 = vmatpush.msrb.mxu0 %v104_v36  ;;  %v93_v20 = vld [vmem:[%s2545_s9 + $0x18] sm:$0xff] }
 0x5ac   :  { %v617_v24 = vadd.f32 %v2055_v18, %v612_v21  ;;  %v109_v21 = vld [vmem:[%s2545_s9 + $0x98] sm:$0xff] }
 0x5ad   :  { %v582_v25 = vmul.f32 %v1683_v6, %v581_v22  ;;  %707 = vmatpush.msrb.mxu0 %v103_v38 }
 0x5ae   :  { %1531 = vmatmul.msk.f32.vlgmr.msrb.gmra.mxu3 %vm47_vm0, %v617_v24  ;;  %1535 = vmatmul.msk.f32.vlgmr.msrb.gmra.mxu2 %vm47_vm0, %v617_v24 }
 0x5af   :  { %v586_v27 = vsel %vm585_vm8, %v1683_v6, %v582_v25  ;;  %708 = vmatpush.msrb.mxu0 %v102_v43  ;;  %v111_v6 = vld [vmem:[%s2545_s9 + $0xa8] sm:$0xff] }
 0x5b0   :  { %v608_v14 = vmul.f32 %v586_v27, %v2006_v39  ;;  %v119_v39 = vld [vmem:[%s2545_s9 + $0xe8] sm:$0xff] }
 0x5b1   :  { %736 = vmatpush.msra.mxu1 %v119_v39  ;;  %709 = vmatpush.msrb.mxu0 %v101_v42 }
 0x5b2   :  { %v613_v29 = vmul.f32 %v2052_v10, %v608_v14 }
 0x5b3   :  { %v555_v30 = vpop.xlane.xlu2 %554  ;;  %737 = vmatpush.msra.mxu1 %v118_v44  ;;  %710 = vmatpush.msrb.mxu0 %v100_v50 }
 0x5b4   :  { %v561_v17 = vmul.f32 %v555_v30, %v1852_v26  ;;  %v618_v34 = vadd.f32 %v2055_v18, %v613_v29  ;;  %v92_v29 = vld [vmem:[%s2545_s9 + $0x10] sm:$0xff] }
 0x5b5   :  { %738 = vmatpush.msra.mxu1 %v117_v48  ;;  %711 = vmatpush.msrb.mxu0 %v99_v41  ;;  %v108_v30 = vld [vmem:[%s2545_s9 + $0x90] sm:$0xff] }
 0x5b6   :  { %v565_v32 = vadd.f32 1e-05, %v561_v17  ;;  %1532 = vmatmul.msk.f32.gmra.mxu3 %vm47_vm0, %v618_v34  ;;  %1536 = vmatmul.msk.f32.gmra.mxu2 %vm47_vm0, %v618_v34  ;;  %v106_v17 = vld [vmem:[%s2545_s9 + $0x80] sm:$0xff] }
 0x5b7   :  { %739 = vmatpush.msra.mxu1 %v116_v51  ;;  %712 = vmatpush.msrb.mxu0 %v98_v55  ;;  %v89_v34 = vld [vmem:[%s2544_s8] sm:$0x3] }
 0x5b8   :  { %1684 = vrsqrt.f32 %v565_v32  ;;  %vm593_vm10 = vweird.f32 %v565_v32  ;;  %v623_v35 = vperm.slane %v89_v34, 1 }
 0x5b9   :  { %740 = vmatpush.msra.mxu1 %v115_v53  ;;  %713 = vmatpush.msrb.mxu0 %v97_v59  ;;  %v704_v59 = vperm.slane %v1901_v8, 5 }
 0x5bb   :  { %v558_v16 = vpop.xlane.xlu2 %557  ;;  %741 = vmatpush.msra.mxu1 %v114_v56  ;;  %714 = vmatpush.msrb.mxu0 %v96_v63 }
 0x5bc   :  { %v562_v40 = vmul.f32 %v558_v16, %v1852_v26 }
 0x5bd   :  { %742 = vmatpush.msra.mxu1 %v113_v60  ;;  %715 = vmatpush.msrb.mxu0 %v95_v5 }
 0x5be   :  { %v1685_v46 = vpop.eup %1684  ;;  %v566_v47 = vadd.f32 1e-05, %v562_v40 }
 0x5bf   :  { %v588_v31 = vmul.f32 %v1685_v46, %v565_v32  ;;  %vm594_vm9 = vweird.f32 %v1685_v46  ;;  %743 = vmatpush.msra.mxu1 %v112_v1  ;;  %716 = vmatpush.msrb.mxu0 %v94_v11  ;;  %v622_v32 = vperm.slane %v89_v34, 0 }
 0x5c0   :  { %1686 = vrsqrt.f32 %v566_v47  ;;  %vm595_vm11 = vmor %vm593_vm10, %vm594_vm9  ;;  %vm603_vm13 = vweird.f32 %v566_v47 }
 0x5c1   :  { %v589_v52 = vmul.f32 %v1685_v46, %v588_v31  ;;  %744 = vmatpush.msra.mxu1 %v111_v6  ;;  %717 = vmatpush.msrb.mxu0 %v93_v20 }
 0x5c3   :  { %v590_v54 = vmul.f32 0.5, %v589_v52  ;;  %718 = vmatpush.msrb.mxu0 %v92_v29 }
 0x5c5   :  { %v591_v57 = vsub.f32 1.5, %v590_v54 }
 0x5c6   :  { %v1687_v58 = vpop.eup %1686 }
 0x5c7   :  { %v592_v61 = vmul.f32 %v1685_v46, %v591_v57  ;;  %v598_v62 = vmul.f32 %v1687_v58, %v566_v47  ;;  %vm604_vm12 = vweird.f32 %v1687_v58 }
 0x5c8   :  { %vm605_vm14 = vmor %vm603_vm13, %vm604_vm12 }
 0x5c9   :  { %v596_v2 = vsel %vm595_vm11, %v1685_v46, %v592_v61  ;;  %v599_v3 = vmul.f32 %v1687_v58, %v598_v62 }
 0x5ca   :  { %v609_v4 = vmul.f32 %v596_v2, %v2013_v45  ;;  %v110_v45 = vld [vmem:[%s2545_s9 + $0xa0] sm:$0xff] }
 0x5cb   :  { %v600_v7 = vmul.f32 0.5, %v599_v3  ;;  %745 = vmatpush.msra.mxu1 %v110_v45 }
 0x5cc   :  { %v614_v9 = vmul.f32 %v2052_v10, %v609_v4 }
 0x5cd   :  { %v601_v13 = vsub.f32 1.5, %v600_v7  ;;  %746 = vmatpush.msra.mxu1 %v109_v21 }
 0x5ce   :  { %v619_v15 = vadd.f32 %v2055_v18, %v614_v9 }
 0x5cf   :  { %v602_v22 = vmul.f32 %v1687_v58, %v601_v13  ;;  %747 = vmatpush.msra.mxu1 %v108_v30 }
 0x5d0   :  { %1533 = vmatmul.msk.f32.gmra.mxu3 %vm47_vm0, %v619_v15  ;;  %1537 = vmatmul.msk.f32.gmra.mxu2 %vm47_vm0, %v619_v15 }
 0x5d1   :  { %v606_v24 = vsel %vm605_vm14, %v1687_v58, %v602_v22 }
 0x5d2   :  { %v610_v25 = vmul.f32 %v606_v24, %v2020_v49  ;;  %v91_v49 = vld [vmem:[%s2545_s9 + $0x8] sm:$0xff] }
 0x5d3   :  { %719 = vmatpush.msrb.mxu0 %v91_v49 }
 0x5d4   :  { %v615_v27 = vmul.f32 %v2052_v10, %v610_v25  ;;  %v107_v10 = vld [vmem:[%s2545_s9 + $0x88] sm:$0xff] }
 0x5d5   :  { %748 = vmatpush.msra.mxu1 %v107_v10 }
 0x5d6   :  { %v620_v14 = vadd.f32 %v2055_v18, %v615_v27  ;;  %v90_v18 = vld [vmem:[%s2545_s9] sm:$0xff] }
 0x5d7   :  { %720 = vmatpush.msrb.mxu0 %v90_v18  ;;  %749 = vmatpush.msra.mxu1 %v106_v17 }
 0x5d8   :  { %1534 = vmatmul.msk.f32.gmra.mxu3 %vm47_vm0, %v620_v14  ;;  %1538 = vmatmul.msk.f32.gmra.mxu2 %vm47_vm0, %v620_v14 }
 0x631   :  { %v655_v12 = vpop.f32.mrf.mxu3  ;;  %v684_v36 = vpop.f32.mrf.mxu2 }
 0x632   :  { %v656_v37 = vadd.f32 %v655_v12, %v622_v32  ;;  %v685_v38 = vadd.f32 %v684_v36, %v623_v35 }
 0x634   :  { %v696_v39 = vmax.f32 %v656_v37, 0.0  ;;  %v697_v16 = vmax.f32 %v685_v38, 0.0 }
 0x636   :  { %721 = vmatmul.f32.vlgmr.msrb.gmra.mxu0 %v696_v39  ;;  %750 = vmatmul.f32.vlgmr.msra.gmra.mxu1 %v697_v16 }
 0x639   :  { %v658_v40 = vpop.f32.mrf.mxu3  ;;  %v687_v43 = vpop.f32.mrf.mxu2 }
 0x63a   :  { %v659_v44 = vadd.f32 %v658_v40, %v622_v32  ;;  %v688_v46 = vadd.f32 %v687_v43, %v623_v35  ;;  %v1542_v43 = vld [vmem:[%s2540_s4 + $0x38] sm:$0xff] }
 0x63b   :  { %950 = vmatpush.msra.mxu3 %v1542_v43 }
 0x63c   :  { %v698_v47 = vmax.f32 %v659_v44, 0.0  ;;  %v699_v42 = vmax.f32 %v688_v46, 0.0  ;;  %v1541_v44 = vld [vmem:[%s2540_s4 + $0x30] sm:$0xff]  ;;  %v1540_v46 = vld [vmem:[%s2540_s4 + $0x28] sm:$0xff] }
 0x63d   :  { %951 = vmatpush.msra.mxu3 %v1541_v44 }
 0x63e   :  { %724 = vmatmul.f32.gmra.mxu0 %v698_v47  ;;  %753 = vmatmul.f32.gmra.mxu1 %v699_v42  ;;  %v1539_v47 = vld [vmem:[%s2540_s4 + $0x20] sm:$0xff] }
 0x63f   :  { %952 = vmatpush.msra.mxu3 %v1540_v46 }
 0x641   :  { %953 = vmatpush.msra.mxu3 %v1539_v47 }
 0x653   :  { %v661_v48 = vpop.f32.mrf.mxu3  ;;  %v690_v31 = vpop.f32.mrf.mxu2 }
 0x654   :  { %v662_v50 = vadd.f32 %v661_v48, %v622_v32  ;;  %v691_v51 = vadd.f32 %v690_v31, %v623_v35 }
 0x656   :  { %v700_v52 = vmax.f32 %v662_v50, 0.0  ;;  %v701_v41 = vmax.f32 %v691_v51, 0.0 }
 0x658   :  { %727 = vmatmul.f32.gmra.mxu0 %v700_v52  ;;  %756 = vmatmul.f32.gmra.mxu1 %v701_v41 }
 0x65b   :  { %v664_v53 = vpop.f32.mrf.mxu3  ;;  %v693_v54 = vpop.f32.mrf.mxu2 }
 0x65c   :  { %v665_v55 = vadd.f32 %v664_v53, %v622_v32  ;;  %v694_v56 = vadd.f32 %v693_v54, %v623_v35 }
 0x65e   :  { %v702_v57 = vmax.f32 %v665_v55, 0.0  ;;  %v703_v58 = vmax.f32 %v694_v56, 0.0  ;;  %v2235_v56 = vld [vmem:[%s2546_s10 + $0x8] sm:$0x3f] }
 0x660   :  { %730 = vmatmul.f32.gmra.mxu0 %v702_v57  ;;  %759 = vmatmul.f32.gmra.mxu1 %v703_v58 }
 0x6b3   :  { %v722_v60 = vpop.f32.mrf.mxu0  ;;  %v751_v61 = vpop.f32.mrf.mxu1 }
 0x6b4   :  { %v723_v62 = vadd.f32 %v722_v60, %v704_v59 }
 0x6b6   :  { %v752_v63 = vadd.f32 %v751_v61, %v723_v62  ;;  %v913_v61 = vperm.slane %v2235_v56, 0 }
 0x6b8   :  { %v2179_v1 = vadd.f32 %v752_v63, %v1982_v19 }
 0x6ba   :  { %v825_v2 = vsel %vm47_vm0, %v2179_v1, 0.0 }
 0x6bb   :  { %v725_v3 = vpop.f32.mrf.mxu0  ;;  %826 = vadd.xlane.f32.xlu1 %v825_v2  ;;  %v754_v5 = vpop.f32.mrf.mxu1 }
 0x6bc   :  { %v726_v4 = vadd.f32 %v725_v3, %v704_v59  ;;  %v918_v3 = vperm.slane %v2235_v56, 1 }
 0x6be   :  { %v755_v6 = vadd.f32 %v754_v5, %v726_v4 }
 0x6c0   :  { %v2184_v7 = vadd.f32 %v755_v6, %v1987_v23 }
 0x6c2   :  { %v828_v8 = vsel %vm47_vm0, %v2184_v7, 0.0 }
 0x6c3   :  { %829 = vadd.xlane.f32.xlu2 %v828_v8 }
 0x6d5   :  { %v728_v9 = vpop.f32.mrf.mxu0  ;;  %v757_v11 = vpop.f32.mrf.mxu1 }
 0x6d6   :  { %v729_v45 = vadd.f32 %v728_v9, %v704_v59 }
 0x6d8   :  { %v758_v19 = vadd.f32 %v757_v11, %v729_v45 }
 0x6da   :  { %v2189_v13 = vadd.f32 %v758_v19, %v1992_v28 }
 0x6dc   :  { %v831_v15 = vsel %vm47_vm0, %v2189_v13, 0.0 }
 0x6dd   :  { %832 = vadd.xlane.f32.xlu0 %v831_v15  ;;  %v731_v20 = vpop.f32.mrf.mxu0  ;;  %v760_v22 = vpop.f32.mrf.mxu1 }
 0x6de   :  { %v732_v21 = vadd.f32 %v731_v20, %v704_v59 }
 0x6e0   :  { %v761_v23 = vadd.f32 %v760_v22, %v732_v21 }
 0x6e2   :  { %v2194_v24 = vadd.f32 %v761_v23, %v1997_v33 }
 0x6e4   :  { %v834_v25 = vsel %vm47_vm0, %v2194_v24, 0.0 }
 0x6e5   :  { %835 = vadd.xlane.f32.xlu1 %v834_v25 }
 0x72e   :  { %v827_v27 = vpop.xlane.xlu1 %826 }
 0x72f   :  { %v837_v14 = vmul.f32 %v827_v27, %v1852_v26 }
 0x731   :  { %v841_v28 = vsub.f32 %v2179_v1, %v837_v14 }
 0x733   :  { %v845_v29 = vmul.f32 %v841_v28, %v841_v28 }
 0x735   :  { %v849_v30 = vsel %vm47_vm0, %v845_v29, 0.0 }
 0x736   :  { %850 = vadd.xlane.f32.xlu2 %v849_v30  ;;  %v830_v49 = vpop.xlane.xlu2 %829 }
 0x737   :  { %v838_v10 = vmul.f32 %v830_v49, %v1852_v26 }
 0x739   :  { %v842_v18 = vsub.f32 %v2184_v7, %v838_v10 }
 0x73b   :  { %v846_v33 = vmul.f32 %v842_v18, %v842_v18 }
 0x73d   :  { %v852_v17 = vsel %vm47_vm0, %v846_v33, 0.0 }
 0x73e   :  { %853 = vadd.xlane.f32.xlu0 %v852_v17 }
 0x750   :  { %v833_v34 = vpop.xlane.xlu0 %832 }
 0x751   :  { %v839_v32 = vmul.f32 %v833_v34, %v1852_v26 }
 0x753   :  { %v2206_v35 = vsub.f32 %v2189_v13, %v839_v32 }
 0x755   :  { %v847_v12 = vmul.f32 %v2206_v35, %v2206_v35 }
 0x757   :  { %v855_v36 = vsel %vm47_vm0, %v847_v12, 0.0 }
 0x758   :  { %v836_v37 = vpop.xlane.xlu1 %835  ;;  %856 = vadd.xlane.f32.xlu1 %v855_v36 }
 0x759   :  { %v840_v38 = vmul.f32 %v836_v37, %v1852_v26 }
 0x75b   :  { %v2213_v39 = vsub.f32 %v2194_v24, %v840_v38 }
 0x75d   :  { %v848_v16 = vmul.f32 %v2213_v39, %v2213_v39 }
 0x75f   :  { %v858_v40 = vsel %vm47_vm0, %v848_v16, 0.0 }
 0x760   :  { %859 = vadd.xlane.f32.xlu2 %v858_v40 }
 0x7a9   :  { %v851_v42 = vpop.xlane.xlu2 %850 }
 0x7aa   :  { %v861_v48 = vmul.f32 %v851_v42, %v1852_v26 }
 0x7ac   :  { %v865_v31 = vadd.f32 1e-05, %v861_v48 }
 0x7ae   :  { %1688 = vrsqrt.f32 %v865_v31  ;;  %vm875_vm1 = vweird.f32 %v865_v31 }
 0x7b1   :  { %v854_v50 = vpop.xlane.xlu0 %853 }
 0x7b2   :  { %v862_v51 = vmul.f32 %v854_v50, %v1852_v26 }
 0x7b4   :  { %v1689_v52 = vpop.eup %1688  ;;  %v866_v41 = vadd.f32 1e-05, %v862_v51 }
 0x7b5   :  { %v870_v53 = vmul.f32 %v1689_v52, %v865_v31  ;;  %vm876_vm15 = vweird.f32 %v1689_v52 }
 0x7b6   :  { %1690 = vrsqrt.f32 %v866_v41  ;;  %vm877_vm3 = vmor %vm875_vm1, %vm876_vm15  ;;  %vm885_vm5 = vweird.f32 %v866_v41 }
 0x7b7   :  { %v871_v54 = vmul.f32 %v1689_v52, %v870_v53 }
 0x7b9   :  { %v872_v55 = vmul.f32 0.5, %v871_v54 }
 0x7bb   :  { %v873_v57 = vsub.f32 1.5, %v872_v55 }
 0x7bc   :  { %v1691_v58 = vpop.eup %1690 }
 0x7bd   :  { %v874_v59 = vmul.f32 %v1689_v52, %v873_v57  ;;  %v880_v60 = vmul.f32 %v1691_v58, %v866_v41  ;;  %vm886_vm4 = vweird.f32 %v1691_v58 }
 0x7be   :  { %vm887_vm6 = vmor %vm885_vm5, %vm886_vm4 }
 0x7bf   :  { %v878_v62 = vsel %vm877_vm3, %v1689_v52, %v874_v59  ;;  %v881_v63 = vmul.f32 %v1691_v58, %v880_v60 }
 0x7c0   :  { %v909_v2 = vmul.f32 %v878_v62, %v841_v28 }
 0x7c1   :  { %v882_v4 = vmul.f32 0.5, %v881_v63 }
 0x7c2   :  { %v914_v5 = vmul.f32 %v913_v61, %v909_v2 }
 0x7c3   :  { %v883_v6 = vsub.f32 1.5, %v882_v4 }
 0x7c4   :  { %v919_v8 = vadd.f32 %v918_v3, %v914_v5 }
 0x7c5   :  { %v884_v9 = vmul.f32 %v1691_v58, %v883_v6 }
 0x7c6   :  { %1590 = vmatmul.msk.f32.vlgmr.msra.gmra.mxu3 %vm47_vm0, %v919_v8 }
 0x7c7   :  { %v888_v11 = vsel %vm887_vm6, %v1691_v58, %v884_v9 }
 0x7c8   :  { %v910_v45 = vmul.f32 %v888_v11, %v842_v18 }
 0x7ca   :  { %v915_v19 = vmul.f32 %v913_v61, %v910_v45 }
 0x7cb   :  { %v857_v15 = vpop.xlane.xlu1 %856 }
 0x7cc   :  { %v863_v20 = vmul.f32 %v857_v15, %v1852_v26  ;;  %v920_v21 = vadd.f32 %v918_v3, %v915_v19 }
 0x7ce   :  { %v867_v22 = vadd.f32 1e-05, %v863_v20  ;;  %1591 = vmatmul.msk.f32.gmra.mxu3 %vm47_vm0, %v920_v21 }
 0x7d0   :  { %1692 = vrsqrt.f32 %v867_v22  ;;  %vm895_vm8 = vweird.f32 %v867_v22 }
 0x7d3   :  { %v860_v23 = vpop.xlane.xlu2 %859 }
 0x7d4   :  { %v864_v25 = vmul.f32 %v860_v23, %v1852_v26 }
 0x7d6   :  { %v1693_v27 = vpop.eup %1692  ;;  %v868_v14 = vadd.f32 1e-05, %v864_v25 }
 0x7d7   :  { %v890_v28 = vmul.f32 %v1693_v27, %v867_v22  ;;  %vm896_vm7 = vweird.f32 %v1693_v27 }
 0x7d8   :  { %1694 = vrsqrt.f32 %v868_v14  ;;  %vm897_vm9 = vmor %vm895_vm8, %vm896_vm7  ;;  %vm905_vm11 = vweird.f32 %v868_v14 }
 0x7d9   :  { %v891_v29 = vmul.f32 %v1693_v27, %v890_v28 }
 0x7db   :  { %v892_v30 = vmul.f32 0.5, %v891_v29 }
 0x7dd   :  { %v893_v49 = vsub.f32 1.5, %v892_v30 }
 0x7de   :  { %v1695_v10 = vpop.eup %1694 }
 0x7df   :  { %v894_v18 = vmul.f32 %v1693_v27, %v893_v49  ;;  %v900_v33 = vmul.f32 %v1695_v10, %v868_v14  ;;  %vm906_vm10 = vweird.f32 %v1695_v10 }
 0x7e0   :  { %vm907_vm12 = vmor %vm905_vm11, %vm906_vm10 }
 0x7e1   :  { %v898_v17 = vsel %vm897_vm9, %v1693_v27, %v894_v18  ;;  %v901_v34 = vmul.f32 %v1695_v10, %v900_v33 }
 0x7e2   :  { %v911_v32 = vmul.f32 %v898_v17, %v2206_v35  ;;  %v1653_v35 = vld [vmem:[%s2541_s5 + $0x1] ss:$0 sm:$0xff] }
 0x7e3   :  { %v902_v12 = vmul.f32 0.5, %v901_v34 }
 0x7e4   :  { %v916_v36 = vmul.f32 %v913_v61, %v911_v32 }
 0x7e5   :  { %v903_v37 = vsub.f32 1.5, %v902_v12 }
 0x7e6   :  { %v921_v38 = vadd.f32 %v918_v3, %v916_v36 }
 0x7e7   :  { %v904_v16 = vmul.f32 %v1695_v10, %v903_v37 }
 0x7e8   :  { %1592 = vmatmul.msk.f32.gmra.mxu3 %vm47_vm0, %v921_v38 }
 0x7e9   :  { %v908_v40 = vsel %vm907_vm12, %v1695_v10, %v904_v16 }
 0x7ea   :  { %v912_v43 = vmul.f32 %v908_v40, %v2213_v39 }
 0x7ec   :  { %v917_v44 = vmul.f32 %v913_v61, %v912_v43 }
 0x7ee   :  { %v922_v46 = vadd.f32 %v918_v3, %v917_v44 }
 0x7f0   :  { %1593 = vmatmul.msk.f32.gmra.mxu3 %vm47_vm0, %v922_v46 }
 0x849   :  { %v955_v47 = vpop.f32.mrf.mxu3 }
 0x84a   :  { %v956_v42 = vadd.f32 %v1653_v35, %v955_v47 }
 0x84c   :  { %969 = vrot.lane.b32.xlu1 %v956_v42, %s1748_s17 }
 0x851   :  { %v958_v48 = vpop.f32.mrf.mxu3 }
 0x852   :  { %v959_v31 = vadd.f32 %v1653_v35, %v958_v48 }
 0x854   :  { %971 = vrot.lane.b32.xlu0 %v959_v31, %s1748_s17  ;;  %v1639_v19 = vpack.i.bf16 %v956_v42, %v959_v31 }
 0x86b   :  { %v961_v50 = vpop.f32.mrf.mxu3 }
 0x86c   :  { %v2252_v51 = vadd.f32 %v1653_v35, %v961_v50 }
 0x86e   :  { %1069 = vrot.lane.b32.xlu0 %v2252_v51, %s1748_s17 }
 0x873   :  { %v964_v39 = vpop.f32.mrf.mxu3 }
 0x874   :  { %v2256_v52 = vadd.f32 %v1653_v35, %v964_v39 }
 0x876   :  { %1071 = vrot.lane.b32.xlu2 %v2256_v52, %s1748_s17  ;;  %v1644_v16 = vpack.i.bf16 %v2252_v51, %v2256_v52 }
 0x8be   :  { %v970_v53 = vpop.permute.xlu1 %969 }
 0x8c6   :  { %v972_v41 = vpop.permute.xlu0 %971 }
 0x8c7   :  { %1594 = vmatpush.xpose.msk.msra.mxu2 %vm47_vm0, %v972_v41 }
 0x8cb   :  { %1595 = vmatpush.xpose.msk.msra.mxu2 %vm47_vm0, %v970_v53 }
 0x8ce   :  { %1596 = vmatmul.msk.f32.vlgmr.msra.gmra.mxu2 %vm47_vm0, %v956_v42 }
 0x8d0   :  { %v1072_v54 = vpop.permute.xlu2 %1071 }
 0x8d1   :  { %1600 = vmatpush.xpose.msk.msrb.mxu2 %vm47_vm0, %v1072_v54  ;;  %v1547_v54 = vld [vmem:[%s2542_s6 + $0x38] sm:$0xff] }
 0x8d2   :  { %1196 = vmatpush.msrb.mxu1 %v1547_v54 }
 0x8d6   :  { %1597 = vmatmul.msk.f32.gmra.mxu2 %vm47_vm0, %v959_v31 }
 0x8e0   :  { %v1070_v55 = vpop.permute.xlu0 %1069 }
 0x8e1   :  { %1601 = vmatpush.xpose.msk.msrb.mxu2 %vm47_vm0, %v1070_v55  ;;  %v1546_v55 = vld [vmem:[%s2542_s6 + $0x30] sm:$0xff] }
 0x8e2   :  { %1197 = vmatpush.msrb.mxu1 %v1546_v55 }
 0x8e4   :  { %1602 = vmatmul.msk.f32.vlgmr.msrb.gmra.mxu2 %vm47_vm0, %v2252_v51 }
 0x8ec   :  { %1603 = vmatmul.msk.f32.gmra.mxu2 %vm47_vm0, %v2256_v52 }
 0x951   :  { %v998_v57 = vpop.f32.mrf.mxu2 }
 0x952   :  { %v1004_v58 = vmul.f32 0.17677669, %v998_v57  ;;  %v1545_v57 = vld [vmem:[%s2542_s6 + $0x28] sm:$0xff] }
 0x953   :  { %1198 = vmatpush.msrb.mxu1 %v1545_v57 }
 0x954   :  { %v1006_v59 = vadd.f32 %v1004_v58, %v1938_v0  ;;  %v1544_v58 = vld [vmem:[%s2542_s6 + $0x20] sm:$0xff] }
 0x955   :  { %1199 = vmatpush.msrb.mxu1 %v1544_v58 }
 0x956   :  { %v1008_v60 = vsel %vm313_vm2, %v1006_v59, -inf }
 0x957   :  { %1009 = vmax.xlane.f32.xlu1 %v1008_v60 }
 0x959   :  { %v1001_v61 = vpop.f32.mrf.mxu2 }
 0x95a   :  { %v1005_v62 = vmul.f32 0.17677669, %v1001_v61 }
 0x95c   :  { %v1007_v63 = vadd.f32 %v1005_v62, %v1938_v0 }
 0x95e   :  { %v1011_v2 = vsel %vm313_vm2, %v1007_v63, -inf }
 0x95f   :  { %1012 = vmax.xlane.f32.xlu0 %v1011_v2 }
 0x967   :  { %v1098_v3 = vpop.f32.mrf.mxu2 }
 0x968   :  { %v1104_v4 = vmul.f32 0.17677669, %v1098_v3 }
 0x96a   :  { %v1106_v5 = vadd.f32 %v1104_v4, %v1938_v0 }
 0x96c   :  { %v1108_v6 = vsel %vm313_vm2, %v1106_v5, -inf }
 0x96d   :  { %1109 = vmax.xlane.f32.xlu2 %v1108_v6 }
 0x96f   :  { %v1101_v8 = vpop.f32.mrf.mxu2 }
 0x970   :  { %v1105_v9 = vmul.f32 0.17677669, %v1101_v8 }
 0x972   :  { %v1107_v11 = vadd.f32 %v1105_v9, %v1938_v0 }
 0x974   :  { %v1111_v45 = vsel %vm313_vm2, %v1107_v11, -inf }
 0x975   :  { %1112 = vmax.xlane.f32.xlu1 %v1111_v45 }
 0x985   :  { %1640 = vrot.lane.b32.xlu2 %v1639_v19, %s1750_s18 }
 0x9ca   :  { %v1010_v15 = vpop.xlane.xlu1 %1009 }
 0x9cb   :  { %v1014_v20 = vsub.f32 %v1006_v59, %v1010_v15 }
 0x9cd   :  { %v1016_v21 = vmul.f32 1.442695, %v1014_v20 }
 0x9cf   :  { %1696 = vpow2.f32 %v1016_v21 }
 0x9d2   :  { %v1013_v22 = vpop.xlane.xlu0 %1012 }
 0x9d3   :  { %v1015_v23 = vsub.f32 %v1007_v63, %v1013_v22 }
 0x9d5   :  { %v1697_v25 = vpop.eup %1696  ;;  %v1018_v27 = vmul.f32 1.442695, %v1015_v23 }
 0x9d6   :  { %v1020_v14 = vsel %vm313_vm2, %v1697_v25, 0.0 }
 0x9d7   :  { %1698 = vpow2.f32 %v1018_v27  ;;  %1021 = vadd.xlane.f32.xlu0 %v1020_v14 }
 0x9dd   :  { %v1699_v28 = vpop.eup %1698 }
 0x9de   :  { %v1023_v0 = vsel %vm313_vm2, %v1699_v28, 0.0 }
 0x9df   :  { %1024 = vadd.xlane.f32.xlu1 %v1023_v0 }
 0x9e0   :  { %v1110_v29 = vpop.xlane.xlu2 %1109 }
 0x9e1   :  { %v1114_v30 = vsub.f32 %v1106_v5, %v1110_v29  ;;  %v1171_v5 = vperm.slane %v2235_v56, 4 }
 0x9e3   :  { %v1116_v49 = vmul.f32 1.442695, %v1114_v30 }
 0x9e5   :  { %1700 = vpow2.f32 %v1116_v49 }
 0x9e8   :  { %v1641_v10 = vpop.permute.xlu2 %1640  ;;  %v1113_v18 = vpop.xlane.xlu1 %1112 }
 0x9e9   :  { %v1642_v33 = vunpack.i.l.bf16 %v1641_v10  ;;  %v1115_v17 = vsub.f32 %v1107_v11, %v1113_v18  ;;  %v1643_v32 = vunpack.i.h.bf16 %v1641_v10 }
 0x9eb   :  { %v1701_v34 = vpop.eup %1700  ;;  %v1118_v12 = vmul.f32 1.442695, %v1115_v17  ;;  %1056 = vmatpush.msrb.mxu3 %v1642_v33 }
 0x9ec   :  { %v1120_v36 = vsel %vm313_vm2, %v1701_v34, 0.0 }
 0x9ed   :  { %1702 = vpow2.f32 %v1118_v12  ;;  %1121 = vadd.xlane.f32.xlu0 %v1120_v36  ;;  %1057 = vmatpush.msrb.mxu3 %v1643_v32 }
 0x9f3   :  { %v1703_v37 = vpop.eup %1702 }
 0x9f4   :  { %v1123_v38 = vsel %vm313_vm2, %v1703_v37, 0.0 }
 0x9f5   :  { %1124 = vadd.xlane.f32.xlu0 %v1123_v38 }
 0x9f8   :  { %1645 = vrot.lane.b32.xlu1 %v1644_v16, %s1750_s18 }
 0xa4a   :  { %v1022_v40 = vpop.xlane.xlu0 %1021 }
 0xa4b   :  { %1704 = vrcp.f32 %v1022_v40 }
 0xa51   :  { %v1705_v43 = vpop.eup %1704 }
 0xa52   :  { %v1028_v44 = vmul.f32 %v1705_v43, %v1697_v25  ;;  %v1025_v46 = vpop.xlane.xlu1 %1024 }
 0xa53   :  { %1706 = vrcp.f32 %v1025_v46  ;;  %v1555_v46 = vld [vmem:[%s2543_s7 + $0x78] sm:$0xff] }
 0xa54   :  { %1598 = vmatmul.msk.f32.vlgmr.msrb.gmra.mxu3 %vm313_vm2, %v1028_v44  ;;  %v1554_v44 = vld [vmem:[%s2543_s7 + $0x70] sm:$0xff]  ;;  %1373 = vmatpush.msra.mxu2 %v1555_v46  ;;  %v1582_v46 = vld [vmem:[%s2545_s9 + $0x1c8] sm:$0xff] }
 0xa55   :  { %1344 = vmatpush.msra.mxu3 %v1554_v44  ;;  %v1566_v44 = vld [vmem:[%s2545_s9 + $0x148] sm:$0xff] }
 0xa59   :  { %v1707_v35 = vpop.eup %1706 }
 0xa5a   :  { %v1029_v47 = vmul.f32 %v1707_v35, %v1699_v28  ;;  %v1552_v35 = vld [vmem:[%s2543_s7 + $0x60] sm:$0xff] }
 0xa5b   :  { %1345 = vmatpush.msra.mxu3 %v1552_v35 }
 0xa5c   :  { %1599 = vmatmul.msk.f32.gmra.mxu3 %vm313_vm2, %v1029_v47  ;;  %v1553_v47 = vld [vmem:[%s2543_s7 + $0x68] sm:$0xff] }
 0xa5d   :  { %1374 = vmatpush.msra.mxu2 %v1553_v47  ;;  %v1565_v47 = vld [vmem:[%s2545_s9 + $0x140] sm:$0xff] }
 0xa60   :  { %v1122_v42 = vpop.xlane.xlu0 %1121 }
 0xa61   :  { %1708 = vrcp.f32 %v1122_v42  ;;  %v1550_v42 = vld [vmem:[%s2543_s7 + $0x50] sm:$0xff] }
 0xa62   :  { %1346 = vmatpush.msra.mxu3 %v1550_v42  ;;  %v1581_v42 = vld [vmem:[%s2545_s9 + $0x1c0] sm:$0xff] }
 0xa67   :  { %v1709_v50 = vpop.eup %1708 }
 0xa68   :  { %v1125_v48 = vpop.xlane.xlu0 %1124  ;;  %v1128_v52 = vmul.f32 %v1709_v50, %v1701_v34  ;;  %v1549_v50 = vld [vmem:[%s2543_s7 + $0x48] sm:$0xff] }
 0xa69   :  { %1710 = vrcp.f32 %v1125_v48  ;;  %v1551_v48 = vld [vmem:[%s2543_s7 + $0x58] sm:$0xff] }
 0xa6a   :  { %v1646_v31 = vpop.permute.xlu1 %1645  ;;  %1375 = vmatpush.msra.mxu2 %v1551_v48 }
 0xa6b   :  { %v1647_v51 = vunpack.i.l.bf16 %v1646_v31  ;;  %v1648_v39 = vunpack.i.h.bf16 %v1646_v31  ;;  %v1548_v31 = vld [vmem:[%s2543_s7 + $0x40] sm:$0xff] }
 0xa6c   :  { %1347 = vmatpush.msra.mxu3 %v1548_v31  ;;  %1376 = vmatpush.msra.mxu2 %v1549_v50  ;;  %v1564_v50 = vld [vmem:[%s2545_s9 + $0x138] sm:$0xff] }
 0xa6d   :  { %1156 = vmatpush.msra.mxu0 %v1647_v51 }
 0xa6f   :  { %1157 = vmatpush.msra.mxu0 %v1648_v39  ;;  %v1711_v41 = vpop.eup %1710 }
 0xa70   :  { %1604 = vmatmul.msk.f32.vlgmr.msra.gmra.mxu0 %vm313_vm2, %v1128_v52  ;;  %v1129_v53 = vmul.f32 %v1711_v41, %v1703_v37 }
 0xa78   :  { %1605 = vmatmul.msk.f32.gmra.mxu0 %vm313_vm2, %v1129_v53 }
 0xad7   :  { %v1059_v59 = vpop.f32.mrf.mxu3 }
 0xad8   :  { %1065 = vst.msk [vmem:[#allocation3] sm:$0xff] %vm47_vm0, %v1059_v59 }
 0xadf   :  { %v1062_v60 = vpop.f32.mrf.mxu3  ;;  %v1167_v61 = vld [vmem:[#allocation3] sm:$0xff] }
 0xae0   :  { %1066 = vst.msk [vmem:[#allocation3 + $0x8] sm:$0xff] %vm47_vm0, %v1062_v60  ;;  %1606 = vmatmul.msk.f32.vlgmr.msrb.gmra.mxu1 %vm47_vm0, %v1167_v61 }
 0xae7   :  { %v1168_v62 = vld [vmem:[#allocation3 + $0x8] sm:$0xff] }
 0xae8   :  { %1607 = vmatmul.msk.f32.gmra.mxu1 %vm47_vm0, %v1168_v62 }
 0xaed   :  { %v1159_v63 = vpop.f32.mrf.mxu0 }
 0xaee   :  { %1165 = vst.msk [vmem:[#allocation3 + $0x10] sm:$0xff] %vm47_vm0, %v1159_v63 }
 0xaf5   :  { %v1162_v2 = vpop.f32.mrf.mxu0  ;;  %v1169_v3 = vld [vmem:[#allocation3 + $0x10] sm:$0xff] }
 0xaf6   :  { %1166 = vst.msk [vmem:[#allocation3 + $0x18] sm:$0xff] %vm47_vm0, %v1162_v2  ;;  %1608 = vmatmul.msk.f32.gmra.mxu1 %vm47_vm0, %v1169_v3  ;;  %v2382_v2 = vperm.slane %v2235_v56, 2 }
 0xafd   :  { %v1170_v4 = vld [vmem:[#allocation3 + $0x18] sm:$0xff] }
 0xafe   :  { %1609 = vmatmul.msk.f32.gmra.mxu1 %vm47_vm0, %v1170_v4 }
 0xb5d   :  { %v1201_v6 = vpop.f32.mrf.mxu1 }
 0xb5e   :  { %v1202_v8 = vadd.f32 %v1201_v6, %v1171_v5 }
 0xb60   :  { %v2312_v9 = vadd.f32 %v1202_v8, %v2179_v1 }
 0xb62   :  { %v1217_v11 = vsel %vm47_vm0, %v2312_v9, 0.0 }
 0xb63   :  { %1218 = vadd.xlane.f32.xlu0 %v1217_v11  ;;  %v2386_v11 = vperm.slane %v2235_v56, 3 }
 0xb65   :  { %v1204_v45 = vpop.f32.mrf.mxu1 }
 0xb66   :  { %v1205_v19 = vadd.f32 %v1204_v45, %v1171_v5 }
 0xb68   :  { %v2317_v15 = vadd.f32 %v1205_v19, %v2184_v7 }
 0xb6a   :  { %v1220_v20 = vsel %vm47_vm0, %v2317_v15, 0.0 }
 0xb6b   :  { %1221 = vadd.xlane.f32.xlu2 %v1220_v20 }
 0xb73   :  { %v1207_v21 = vpop.f32.mrf.mxu1 }
 0xb74   :  { %v1208_v22 = vadd.f32 %v1207_v21, %v1171_v5 }
 0xb76   :  { %v2322_v23 = vadd.f32 %v1208_v22, %v2189_v13 }
 0xb78   :  { %v1223_v1 = vsel %vm47_vm0, %v2322_v23, 0.0 }
 0xb79   :  { %1224 = vadd.xlane.f32.xlu0 %v1223_v1  ;;  %v1572_v1 = vld [vmem:[%s2545_s9 + $0x178] sm:$0xff] }
 0xb7a   :  { %1399 = vmatpush.msrb.mxu0 %v1572_v1  ;;  %v1573_v1 = vld [vmem:[%s2545_s9 + $0x180] sm:$0xff] }
 0xb7b   :  { %v1210_v25 = vpop.f32.mrf.mxu1 }
 0xb7c   :  { %v1211_v27 = vadd.f32 %v1210_v25, %v1171_v5  ;;  %v1588_v25 = vld [vmem:[%s2545_s9 + $0x1f8] sm:$0xff] }
 0xb7d   :  { %1428 = vmatpush.msra.mxu1 %v1588_v25  ;;  %v1556_v25 = vld [vmem:[%s2544_s8 + $0x2] sm:$0x3] }
 0xb7e   :  { %v2327_v14 = vadd.f32 %v1211_v27, %v2194_v24  ;;  %v1571_v27 = vld [vmem:[%s2545_s9 + $0x170] sm:$0xff] }
 0xb7f   :  { %1400 = vmatpush.msrb.mxu0 %v1571_v27  ;;  %v1462_v27 = vld [vmem:[%s2539_s3 + $0x8] sm:$0xff] }
 0xb80   :  { %v1226_v7 = vsel %vm47_vm0, %v2327_v14, 0.0 }
 0xb81   :  { %1227 = vadd.xlane.f32.xlu0 %v1226_v7 }
 0xbd6   :  { %v1219_v28 = vpop.xlane.xlu0 %1218 }
 0xbd7   :  { %v1229_v0 = vmul.f32 %v1219_v28, %v1852_v26  ;;  %v1587_v28 = vld [vmem:[%s2545_s9 + $0x1f0] sm:$0xff] }
 0xbd8   :  { %1429 = vmatpush.msra.mxu1 %v1587_v28  ;;  %v1316_v28 = vperm.slane %v1556_v25, 0 }
 0xbd9   :  { %v1233_v29 = vsub.f32 %v2312_v9, %v1229_v0  ;;  %v1570_v0 = vld [vmem:[%s2545_s9 + $0x168] sm:$0xff] }
 0xbda   :  { %1401 = vmatpush.msrb.mxu0 %v1570_v0  ;;  %v1317_v0 = vperm.slane %v1556_v25, 1 }
 0xbdb   :  { %v1237_v13 = vmul.f32 %v1233_v29, %v1233_v29 }
 0xbdd   :  { %v1241_v30 = vsel %vm47_vm0, %v1237_v13, 0.0 }
 0xbde   :  { %v1222_v49 = vpop.xlane.xlu2 %1221  ;;  %1242 = vadd.xlane.f32.xlu1 %v1241_v30 }
 0xbdf   :  { %v1230_v10 = vmul.f32 %v1222_v49, %v1852_v26 }
 0xbe1   :  { %v2336_v18 = vsub.f32 %v2317_v15, %v1230_v10 }
 0xbe3   :  { %v1238_v24 = vmul.f32 %v2336_v18, %v2336_v18 }
 0xbe5   :  { %v1244_v33 = vsel %vm47_vm0, %v1238_v24, 0.0  ;;  %v1569_v24 = vld [vmem:[%s2545_s9 + $0x160] sm:$0xff] }
 0xbe6   :  { %1245 = vadd.xlane.f32.xlu0 %v1244_v33  ;;  %v1585_v33 = vld [vmem:[%s2545_s9 + $0x1e0] sm:$0xff]  ;;  %1402 = vmatpush.msrb.mxu0 %v1569_v24 }
 0xbec   :  { %v1225_v17 = vpop.xlane.xlu0 %1224 }
 0xbed   :  { %v1231_v34 = vmul.f32 %v1225_v17, %v1852_v26 }
 0xbef   :  { %v2343_v32 = vsub.f32 %v2322_v23, %v1231_v34 }
 0xbf1   :  { %v1239_v12 = vmul.f32 %v2343_v32, %v2343_v32 }
 0xbf3   :  { %v1247_v36 = vsel %vm47_vm0, %v1239_v12, 0.0 }
 0xbf4   :  { %1248 = vadd.xlane.f32.xlu0 %v1247_v36  ;;  %v1228_v37 = vpop.xlane.xlu0 %1227 }
 0xbf5   :  { %v1232_v38 = vmul.f32 %v1228_v37, %v1852_v26 }
 0xbf7   :  { %v2350_v16 = vsub.f32 %v2327_v14, %v1232_v38  ;;  %v1567_v38 = vld [vmem:[%s2545_s9 + $0x150] sm:$0xff] }
 0xbf9   :  { %v1240_v40 = vmul.f32 %v2350_v16, %v2350_v16 }
 0xbfb   :  { %v1250_v43 = vsel %vm47_vm0, %v1240_v40, 0.0  ;;  %v1583_v40 = vld [vmem:[%s2545_s9 + $0x1d0] sm:$0xff] }
 0xbfc   :  { %1251 = vadd.xlane.f32.xlu0 %v1250_v43 }
 0xc51   :  { %v1243_v51 = vpop.xlane.xlu1 %1242 }
 0xc52   :  { %v1253_v39 = vmul.f32 %v1243_v51, %v1852_v26  ;;  %v1580_v51 = vld [vmem:[%s2545_s9 + $0x1b8] sm:$0xff] }
 0xc54   :  { %v1257_v52 = vadd.f32 1e-05, %v1253_v39 }
 0xc56   :  { %1712 = vrsqrt.f32 %v1257_v52  ;;  %vm1267_vm13 = vweird.f32 %v1257_v52 }
 0xc59   :  { %v1246_v41 = vpop.xlane.xlu0 %1245 }
 0xc5a   :  { %v1254_v53 = vmul.f32 %v1246_v41, %v1852_v26  ;;  %v1563_v41 = vld [vmem:[%s2545_s9 + $0x130] sm:$0xff] }
 0xc5c   :  { %v1713_v54 = vpop.eup %1712  ;;  %v1258_v55 = vadd.f32 1e-05, %v1254_v53  ;;  %v1579_v53 = vld [vmem:[%s2545_s9 + $0x1b0] sm:$0xff] }
 0xc5d   :  { %v1262_v57 = vmul.f32 %v1713_v54, %v1257_v52  ;;  %vm1268_vm2 = vweird.f32 %v1713_v54 }
 0xc5e   :  { %1714 = vrsqrt.f32 %v1258_v55  ;;  %vm1269_vm14 = vmor %vm1267_vm13, %vm1268_vm2  ;;  %vm1277_vm1 = vweird.f32 %v1258_v55 }
 0xc5f   :  { %v1263_v58 = vmul.f32 %v1713_v54, %v1262_v57 }
 0xc61   :  { %v1264_v59 = vmul.f32 0.5, %v1263_v58  ;;  %v1562_v58 = vld [vmem:[%s2545_s9 + $0x128] sm:$0xff] }
 0xc63   :  { %v1265_v60 = vsub.f32 1.5, %v1264_v59  ;;  %v1578_v59 = vld [vmem:[%s2545_s9 + $0x1a8] sm:$0xff] }
 0xc64   :  { %v1715_v61 = vpop.eup %1714 }
 0xc65   :  { %v1266_v62 = vmul.f32 %v1713_v54, %v1265_v60  ;;  %v1272_v63 = vmul.f32 %v1715_v61, %v1258_v55  ;;  %vm1278_vm15 = vweird.f32 %v1715_v61 }
 0xc66   :  { %vm1279_vm3 = vmor %vm1277_vm1, %vm1278_vm15 }
 0xc67   :  { %v1270_v3 = vsel %vm1269_vm14, %v1713_v54, %v1266_v62  ;;  %v1273_v4 = vmul.f32 %v1715_v61, %v1272_v63  ;;  %v1249_v5 = vpop.xlane.xlu0 %1248  ;;  %v1561_v62 = vld [vmem:[%s2545_s9 + $0x120] sm:$0xff] }
 0xc68   :  { %v1301_v6 = vmul.f32 %v1270_v3, %v1233_v29  ;;  %v1255_v8 = vmul.f32 %v1249_v5, %v1852_v26  ;;  %v1586_v29 = vld [vmem:[%s2545_s9 + $0x1e8] sm:$0xff]  ;;  %v1576_v5 = vld [vmem:[%s2545_s9 + $0x198] sm:$0xff] }
 0xc69   :  { %v1274_v45 = vmul.f32 0.5, %v1273_v4  ;;  %1430 = vmatpush.msra.mxu1 %v1586_v29  ;;  %v1560_v4 = vld [vmem:[%s2545_s9 + $0x118] sm:$0xff] }
 0xc6a   :  { %v1306_v19 = vmul.f32 %v2382_v2, %v1301_v6  ;;  %v2389_v20 = vadd.f32 1e-05, %v1255_v8 }
 0xc6b   :  { %v1275_v21 = vsub.f32 1.5, %v1274_v45  ;;  %1431 = vmatpush.msra.mxu1 %v1585_v33  ;;  %v1463_v33 = vld [vmem:[%s2539_s3 + $0x10] sm:$0xff] }
 0xc6c   :  { %1716 = vrsqrt.f32 %v2389_v20  ;;  %v1311_v22 = vadd.f32 %v2386_v11, %v1306_v19  ;;  %vm1287_vm5 = vweird.f32 %v2389_v20 }
 0xc6d   :  { %v1276_v7 = vmul.f32 %v1715_v61, %v1275_v21  ;;  %v1559_v21 = vld [vmem:[%s2545_s9 + $0x110] sm:$0xff] }
 0xc6e   :  { %1610 = vmatmul.msk.f32.vlgmr.msra.gmra.mxu3 %vm47_vm0, %v1311_v22  ;;  %1614 = vmatmul.msk.f32.vlgmr.msra.gmra.mxu2 %vm47_vm0, %v1311_v22  ;;  %v1575_v22 = vld [vmem:[%s2545_s9 + $0x190] sm:$0xff] }
 0xc6f   :  { %v1280_v13 = vsel %vm1279_vm3, %v1715_v61, %v1276_v7  ;;  %v1252_v30 = vpop.xlane.xlu0 %1251  ;;  %v1751_v7 = vmov 0  }
 0xc70   :  { %v1256_v49 = vmul.f32 %v1252_v30, %v1852_v26  ;;  %v1302_v10 = vmul.f32 %v1280_v13, %v2336_v18  ;;  %v1568_v26 = vld [vmem:[%s2545_s9 + $0x158] sm:$0xff]  ;;  %1650 = vset.pattern.permute.xlu0 %v1751_v7  ;;  %1651 = vset.pattern.permute.xlu1 %v1751_v7 }
 0xc71   :  { %v1584_v18 = vld [vmem:[%s2545_s9 + $0x1d8] sm:$0xff]  ;;  %1403 = vmatpush.msrb.mxu0 %v1568_v26  ;;  %1472 = vperm.xlu0 %1650, %v1462_v27  }
 0xc72   :  { %v1717_v17 = vpop.eup %1716  ;;  %v1260_v34 = vadd.f32 1e-05, %v1256_v49  ;;  %v1307_v12 = vmul.f32 %v2382_v2, %v1302_v10  ;;  %1432 = vmatpush.msra.mxu1 %v1584_v18  ;;  %1649 = vset.pattern.permute.xlu2 %v1751_v7 }
 0xc73   :  { %v1282_v36 = vmul.f32 %v1717_v17, %v2389_v20  ;;  %1404 = vmatpush.msrb.mxu0 %v1567_v38  ;;  %vm1288_vm4 = vweird.f32 %v1717_v17  ;;  %1477 = vperm.xlu1 %1651, %v1463_v33  }
 0xc74   :  { %1718 = vrsqrt.f32 %v1260_v34  ;;  %v1312_v37 = vadd.f32 %v2386_v11, %v1307_v12  ;;  %1433 = vmatpush.msra.mxu1 %v1583_v40  ;;  %vm1289_vm6 = vmor %vm1287_vm5, %vm1288_vm4  ;;  %vm1297_vm8 = vweird.f32 %v1260_v34 }
 0xc75   :  { %v1283_v43 = vmul.f32 %v1717_v17, %v1282_v36  ;;  %1405 = vmatpush.msrb.mxu0 %v1566_v44  ;;  %v1464_v36 = vld [vmem:[%s2539_s3 + $0x18] sm:$0xff] }
 0xc76   :  { %1611 = vmatmul.msk.f32.gmra.mxu3 %vm47_vm0, %v1312_v37  ;;  %1615 = vmatmul.msk.f32.gmra.mxu2 %vm47_vm0, %v1312_v37 }
 0xc77   :  { %v1284_v35 = vmul.f32 0.5, %v1283_v43  ;;  %1434 = vmatpush.msra.mxu1 %v1582_v46  ;;  %1406 = vmatpush.msrb.mxu0 %v1565_v47 }
 0xc79   :  { %v1285_v48 = vsub.f32 1.5, %v1284_v35  ;;  %1435 = vmatpush.msra.mxu1 %v1581_v42  ;;  %1407 = vmatpush.msrb.mxu0 %v1564_v50 }
 0xc7a   :  { %v1719_v31 = vpop.eup %1718 }
 0xc7b   :  { %v1286_v39 = vmul.f32 %v1717_v17, %v1285_v48  ;;  %v1292_v52 = vmul.f32 %v1719_v31, %v1260_v34  ;;  %1436 = vmatpush.msra.mxu1 %v1580_v51  ;;  %1408 = vmatpush.msrb.mxu0 %v1563_v41  ;;  %vm1298_vm7 = vweird.f32 %v1719_v31 }
 0xc7c   :  { %vm1299_vm9 = vmor %vm1297_vm8, %vm1298_vm7 }
 0xc7d   :  { %v1290_v54 = vsel %vm1289_vm6, %v1717_v17, %v1286_v39  ;;  %v1293_v55 = vmul.f32 %v1719_v31, %v1292_v52  ;;  %1437 = vmatpush.msra.mxu1 %v1579_v53  ;;  %1409 = vmatpush.msrb.mxu0 %v1562_v58  ;;  %v1461_v17 = vld [vmem:[%s2539_s3] sm:$0xff]  ;;  %v1398_v52 = vperm.slane %v2235_v56, 5  ;;  %s1752_s3 = smov [#allocation4]  }
 0xc7e   :  { %v1303_v57 = vmul.f32 %v1290_v54, %v2343_v32  ;;  %v1577_v32 = vld [vmem:[%s2545_s9 + $0x1a0] sm:$0xff]  ;;  %1467 = vperm.xlu2 %1649, %v1461_v17   ;;  %s1497_s27 = sshll.u32 %s1752_s3, 4  ;;  %s1498_s27 = int_to_ptr.vmem [resolvable:$true] %s1497_s27 }
 0xc7f   :  { %v1294_v60 = vmul.f32 0.5, %v1293_v55  ;;  %1438 = vmatpush.msra.mxu1 %v1578_v59  ;;  %1410 = vmatpush.msrb.mxu0 %v1561_v62 }
 0xc80   :  { %v1308_v61 = vmul.f32 %v2382_v2, %v1303_v57 }
 0xc81   :  { %v1295_v63 = vsub.f32 1.5, %v1294_v60  ;;  %1439 = vmatpush.msra.mxu1 %v1577_v32  ;;  %1411 = vmatpush.msrb.mxu0 %v1560_v4 }
 0xc82   :  { %v1313_v3 = vadd.f32 %v2386_v11, %v1308_v61 }
 0xc83   :  { %v1296_v6 = vmul.f32 %v1719_v31, %v1295_v63  ;;  %1440 = vmatpush.msra.mxu1 %v1576_v5  ;;  %1412 = vmatpush.msrb.mxu0 %v1559_v21 }
 0xc84   :  { %1612 = vmatmul.msk.f32.gmra.mxu3 %vm47_vm0, %v1313_v3  ;;  %1616 = vmatmul.msk.f32.gmra.mxu2 %vm47_vm0, %v1313_v3 }
 0xc85   :  { %v1300_v8 = vsel %vm1299_vm9, %v1719_v31, %v1296_v6  ;;  %1441 = vmatpush.msra.mxu1 %v1575_v22 }
 0xc86   :  { %v1304_v45 = vmul.f32 %v1300_v8, %v2350_v16  ;;  %v1558_v16 = vld [vmem:[%s2545_s9 + $0x108] sm:$0xff]  ;;  %1482 = vperm.xlu2 %1649, %v1464_v36  }
 0xc87   :  { %1413 = vmatpush.msrb.mxu0 %v1558_v16 }
 0xc88   :  { %v1309_v19 = vmul.f32 %v2382_v2, %v1304_v45  ;;  %v1574_v2 = vld [vmem:[%s2545_s9 + $0x188] sm:$0xff] }
 0xc89   :  { %1442 = vmatpush.msra.mxu1 %v1574_v2 }
 0xc8a   :  { %v1314_v20 = vadd.f32 %v2386_v11, %v1309_v19  ;;  %v1557_v11 = vld [vmem:[%s2545_s9 + $0x100] sm:$0xff] }
 0xc8b   :  { %1414 = vmatpush.msrb.mxu0 %v1557_v11  ;;  %1443 = vmatpush.msra.mxu1 %v1573_v1 }
 0xc8c   :  { %1613 = vmatmul.msk.f32.gmra.mxu3 %vm47_vm0, %v1314_v20  ;;  %1617 = vmatmul.msk.f32.gmra.mxu2 %vm47_vm0, %v1314_v20 }
 0xcd8   :  { %v1468_v57 = vpop.permute.xlu2 %1467 }
 0xce0   :  { %v1483_v2 = vpop.permute.xlu2 %1482 }
 0xce3   :  { %v1473_v63 = vpop.permute.xlu0 %1472 }
 0xce5   :  { %v1478_v45 = vpop.permute.xlu1 %1477 }
 0xcf1   :  { %v1349_v29 = vpop.f32.mrf.mxu3  ;;  %v1378_v13 = vpop.f32.mrf.mxu2 }
 0xcf2   :  { %v1350_v30 = vadd.f32 %v1349_v29, %v1316_v28  ;;  %v1379_v49 = vadd.f32 %v1378_v13, %v1317_v0 }
 0xcf4   :  { %v1390_v10 = vmax.f32 %v1350_v30, 0.0  ;;  %v1391_v24 = vmax.f32 %v1379_v49, 0.0 }
 0xcf6   :  { %1415 = vmatmul.f32.vlgmr.msrb.gmra.mxu0 %v1390_v10  ;;  %1444 = vmatmul.f32.vlgmr.msra.gmra.mxu1 %v1391_v24 }
 0xcf9   :  { %v1352_v34 = vpop.f32.mrf.mxu3  ;;  %v1381_v12 = vpop.f32.mrf.mxu2 }
 0xcfa   :  { %v1353_v26 = vadd.f32 %v1352_v34, %v1316_v28  ;;  %v1382_v18 = vadd.f32 %v1381_v12, %v1317_v0 }
 0xcfc   :  { %v1392_v37 = vmax.f32 %v1353_v26, 0.0  ;;  %v1393_v38 = vmax.f32 %v1382_v18, 0.0 }
 0xcfe   :  { %1418 = vmatmul.f32.gmra.mxu0 %v1392_v37  ;;  %1447 = vmatmul.f32.gmra.mxu1 %v1393_v38 }
 0xd07   :  { %v1355_v40 = vpop.f32.mrf.mxu3  ;;  %v1384_v43 = vpop.f32.mrf.mxu2 }
 0xd08   :  { %v1356_v44 = vadd.f32 %v1355_v40, %v1316_v28  ;;  %v1385_v46 = vadd.f32 %v1384_v43, %v1317_v0 }
 0xd0a   :  { %v1394_v35 = vmax.f32 %v1356_v44, 0.0  ;;  %v1395_v47 = vmax.f32 %v1385_v46, 0.0 }
 0xd0c   :  { %1421 = vmatmul.f32.gmra.mxu0 %v1394_v35  ;;  %1450 = vmatmul.f32.gmra.mxu1 %v1395_v47 }
 0xd0f   :  { %v1358_v42 = vpop.f32.mrf.mxu3  ;;  %v1387_v48 = vpop.f32.mrf.mxu2 }
 0xd10   :  { %v1359_v31 = vadd.f32 %v1358_v42, %v1316_v28  ;;  %v1388_v50 = vadd.f32 %v1387_v48, %v1317_v0 }
 0xd12   :  { %v1396_v51 = vmax.f32 %v1359_v31, 0.0  ;;  %v1397_v39 = vmax.f32 %v1388_v50, 0.0 }
 0xd14   :  { %1424 = vmatmul.f32.gmra.mxu0 %v1396_v51  ;;  %1453 = vmatmul.f32.gmra.mxu1 %v1397_v39 }
 0xd73   :  { %v1416_v41 = vpop.f32.mrf.mxu0  ;;  %v1445_v53 = vpop.f32.mrf.mxu1 }
 0xd74   :  { %v1417_v54 = vadd.f32 %v1416_v41, %v1398_v52 }
 0xd76   :  { %v1446_v55 = vadd.f32 %v1445_v53, %v1417_v54 }
 0xd78   :  { %v1457_v58 = vadd.f32 %v1446_v55, %v2312_v9 }
 0xd7a   :  { %v1485_v59 = vmul.f32 %v1468_v57, %v1457_v58 }
 0xd7b   :  { %v1419_v60 = vpop.f32.mrf.mxu0  ;;  %v1448_v62 = vpop.f32.mrf.mxu1 }
 0xd7c   :  { %1489 = vst.msk [vmem:[#allocation4] sm:$0xff] %vm47_vm0, %v1485_v59  ;;  %v1420_v61 = vadd.f32 %v1419_v60, %v1398_v52 }
 0xd7e   :  { %v1449_v32 = vadd.f32 %v1448_v62, %v1420_v61 }
 0xd80   :  { %v1458_v3 = vadd.f32 %v1449_v32, %v2317_v15 }
 0xd82   :  { %v1486_v4 = vmul.f32 %v1473_v63, %v1458_v3 }
 0xd84   :  { %1490 = vst.msk [vmem:[#allocation4 + $0x8] sm:$0xff] %vm47_vm0, %v1486_v4 }
 0xd89   :  { %v1422_v56 = vpop.f32.mrf.mxu0  ;;  %v1451_v5 = vpop.f32.mrf.mxu1 }
 0xd8a   :  { %v1423_v6 = vadd.f32 %v1422_v56, %v1398_v52 }
 0xd8c   :  { %v1452_v8 = vadd.f32 %v1451_v5, %v1423_v6 }
 0xd8e   :  { %v1459_v9 = vadd.f32 %v1452_v8, %v2322_v23 }
 0xd90   :  { %v1487_v19 = vmul.f32 %v1478_v45, %v1459_v9 }
 0xd91   :  { %v1425_v20 = vpop.f32.mrf.mxu0  ;;  %v1454_v22 = vpop.f32.mrf.mxu1 }
 0xd92   :  { %1491 = vst.msk [vmem:[#allocation4 + $0x10] sm:$0xff] %vm47_vm0, %v1487_v19  ;;  %v1426_v21 = vadd.f32 %v1425_v20, %v1398_v52 }
 0xd94   :  { %v1455_v16 = vadd.f32 %v1454_v22, %v1426_v21 }
 0xd96   :  { %v1460_v15 = vadd.f32 %v1455_v16, %v2327_v14 }
 0xd98   :  { %v1488_v11 = vmul.f32 %v1483_v2, %v1460_v15 }
 0xd9a   :  { %1492 = vst.msk [vmem:[#allocation4 + $0x18] sm:$0xff] %vm47_vm0, %v1488_v11 }
 0xd9b   :  { %1505 = dma.vmem_to_hbm [thread:$0]  %s1498_s27, 512, %s1500_s30, [#allocation5], %s1753_s12, %s1753_s12, %s1754_s13  }
 0xd9c   :  { %1744 = dma.done.wait [#allocation5], 512  }
 0xd9d   :  { %1745 = vsyncadd [#allocation5], 4294966784 }
 0xd9e   :  { %1510 = vsyncpa [#allocation5], 1 }

</bundles_post_ra>
